<compile_context>
chip_gen: v7x
topology: tpu7x:2x2x1
jax: 0.10.0
libtpu: 0.0.40
codegen_flags: <defaults>
</compile_context>

<pallas_src>
import functools

import jax
import jax.numpy as jnp
from jax.experimental import pallas as pl
from jax.experimental.pallas import tpu as pltpu

NUM_CLASSES = 9
BN_EPS = 1e-5
_TILE_BUDGET_BYTES = 4 * 1024 * 1024  # target bf16 weight-tile size (double-buffered)


def _round_up(x, m):
    return (x + m - 1) // m * m


def _pick_tile(dim, max_tile, align):
    """Largest multiple of `align` dividing `dim` and <= max_tile (or dim itself if small)."""
    if dim <= max_tile:
        return dim
    best = align
    t = align
    while t <= max_tile:
        if dim % t == 0:
            best = t
        t += align
    return best


def _vmem_limit(block_bytes):
    est = 2 * int(block_bytes) + (8 << 20)  # double-buffering + headroom
    return int(min(max(est, 32 << 20), 100 << 20))


# ---------------------------------------------------------------------------
# Kernel 1: fused matmul + bias (+ optional ReLU):  out = act(X @ W + b)
# bf16 operands, f32 accumulation.  Used for layer1 (im2col) and the FC stack.
# ---------------------------------------------------------------------------
def _matmul_bias_kernel(x_ref, w_ref, b_ref, o_ref, acc_ref, *, relu):
    k = pl.program_id(2)

    @pl.when(k == 0)
    def _():
        acc_ref[...] = jnp.zeros_like(acc_ref)

    acc_ref[...] += jnp.dot(x_ref[...], w_ref[...], preferred_element_type=jnp.float32)

    @pl.when(k == pl.num_programs(2) - 1)
    def _():
        out = acc_ref[...] + b_ref[...]
        if relu:
            out = jnp.maximum(out, 0.0)
        o_ref[...] = out.astype(o_ref.dtype)


def _prep_matmul(w, bias, *, pad_n=True, tm_max=256, **extra):
    """One-time: pad K (and optionally N) to tile multiples, pick tiles, cast bf16."""
    k, n = w.shape
    kp = _round_up(k, 512) if k > 512 else _round_up(k, 128)
    if pad_n:
        np_ = _round_up(n, 512) if n > 512 else _round_up(n, 128)
    else:
        np_ = n
    tn = _pick_tile(np_, 512, 128)
    tk_max = max(512, (_TILE_BUDGET_BYTES // (tn * 2)) // 128 * 128)
    tk = _pick_tile(kp, tk_max, 128)
    w_pad = jnp.pad(w, ((0, kp - k), (0, np_ - n))).astype(jnp.bfloat16)
    b_pad = jnp.pad(bias, (0, np_ - n)).reshape(1, np_).astype(jnp.float32)
    return dict(w=w_pad, shift=b_pad, k=k, n=n, kp=kp, np=np_, tk=tk, tn=tn,
                tm_max=tm_max, **extra)


def matmul_bias(x, prep, *, relu, out_dtype=jnp.bfloat16):
    """x: (M, K) float; returns act(x @ W + b) of shape (M, n) in out_dtype."""
    k, n, kp, np_ = prep["k"], prep["n"], prep["kp"], prep["np"]
    tk, tn = prep["tk"], prep["tn"]
    w_pad, b_pad = prep["w"], prep["shift"]

    m = x.shape[0]
    x = x.astype(jnp.bfloat16)
    if x.shape[1] != kp:                      # cheap for FC; conv1 arrives pre-padded
        x = jnp.pad(x, ((0, 0), (0, kp - x.shape[1])))
    mp = m
    if m < 8:                                 # tiny-batch FC path
        mp = 8
        x = jnp.pad(x, ((0, mp - m), (0, 0)))

    tm = min(prep["tm_max"], _round_up(mp, 8))
    grid = (pl.cdiv(mp, tm), np_ // tn, kp // tk)   # ragged M handled by Pallas

    flops = 2 * mp * kp * np_
    bytes_accessed = x.size * 2 + w_pad.size * 2 + b_pad.size * 4 + mp * np_ * 2
    block_bytes = tm * tk * 2 + tk * tn * 2 + tn * 4 + tm * tn * 2 + tm * tn * 4

    out = pl.pallas_call(
        functools.partial(_matmul_bias_kernel, relu=relu),
        out_shape=jax.ShapeDtypeStruct((mp, np_), out_dtype),
        grid_spec=pltpu.PrefetchScalarGridSpec(
            num_scalar_prefetch=0,
            grid=grid,
            in_specs=[
                pl.BlockSpec((tm, tk), lambda i, j, kk: (i, kk)),
                pl.BlockSpec((tk, tn), lambda i, j, kk: (kk, j)),
                pl.BlockSpec((1, tn), lambda i, j, kk: (0, j)),
            ],
            out_specs=pl.BlockSpec((tm, tn), lambda i, j, kk: (i, j)),
            scratch_shapes=[pltpu.VMEM((tm, tn), jnp.float32)],
        ),
        compiler_params=pltpu.CompilerParams(
            dimension_semantics=("parallel", "parallel", "arbitrary"),
            vmem_limit_bytes=_vmem_limit(block_bytes),
        ),
        cost_estimate=pl.CostEstimate(
            flops=int(flops), transcendentals=0, bytes_accessed=int(bytes_accessed)
        ),
    )(x, w_pad, b_pad)

    if out.shape[0] != m or out.shape[1] != n:
        out = out[:m, :n]
    return out


# ---------------------------------------------------------------------------
# Kernel 2: implicit conv for layer2/layer3.
# Width-only im2col (kw-fold) is built in the wrapper with the row stride
# padded to a multiple of 8; the kh row-taps are accumulated inside the kernel
# as shifted matmuls on a VMEM-resident flattened image:
#   out_row[p] = sum_i xw_flat[p + i*ow8] @ W[i]   (+ BN shift, ReLU)
# ---------------------------------------------------------------------------
def _implicit_conv_kernel(x_ref, w_ref, b_ref, o_ref, *, tm, row_stride, kh, relu):
    row0 = pl.program_id(1) * tm
    oc = o_ref.shape[-1]
    w = w_ref[...]                                   # (kh, kdim, oc), small

    def body(i, acc):
        xs = x_ref[pl.ds(row0 + i * row_stride, tm), :]
        return acc + jnp.dot(xs, w[i], preferred_element_type=jnp.float32)

    acc = jax.lax.fori_loop(0, kh, body, jnp.zeros((tm, oc), jnp.float32), unroll=True)
    out = acc + b_ref[...]
    if relu:
        out = jnp.maximum(out, 0.0)
    o_ref[...] = out.astype(o_ref.dtype)


def conv_bn_relu_implicit(x, prep):
    """x: (N, H, W, C) bf16 -> ((N, OH, OW8, OC) bf16, valid OW).  BN(eval)+bias folded, ReLU."""
    n, h, w, c = x.shape
    kh, kw, pad, oc = prep["kh"], prep["kw"], prep["pad"], prep["oc"]
    oh = h + 2 * pad - kh + 1
    ow = w + 2 * pad - kw + 1
    ow8 = _round_up(ow, 8)            # 8-aligned row stride -> aligned tap reads
    kdim = kw * c                     # dense K depth for the MXU

    # One spatial pad (conv halo + right extension for the padded row stride), bf16.
    xp = jnp.pad(x.astype(jnp.bfloat16),
                 ((0, 0), (pad, pad), (pad, pad + ow8 - ow), (0, 0)))
    # Width-wise im2col (kw-fold only), single materialization.
    xw = jnp.concatenate([xp[:, :, j:j + ow8, :] for j in range(kw)], axis=-1)
    hp = oh + kh - 1
    lpad = hp * ow8                   # flattened rows per image (multiple of 8)
    xf = xw.reshape(n * lpad, kdim)

    m_rows = oh * ow8                 # multiple of 8
    tm = _pick_tile(m_rows, 256, 8)   # divides m_rows -> no ragged rows, no output slice
    mblocks = m_rows // tm

    flops = 2 * n * m_rows * kdim * oc * kh
    bytes_accessed = xf.size * 2 + prep["w"].size * 2 + n * m_rows * oc * 2
    block_bytes = lpad * kdim * 2 + kh * kdim * oc * 2 + oc * 4 + tm * oc * (2 + 4)

    out = pl.pallas_call(
        functools.partial(
            _implicit_conv_kernel, tm=tm, row_stride=ow8, kh=kh, relu=True
        ),
        out_shape=jax.ShapeDtypeStruct((n * m_rows, oc), jnp.bfloat16),
        grid_spec=pltpu.PrefetchScalarGridSpec(
            num_scalar_prefetch=0,
            grid=(n, mblocks),
            in_specs=[
                pl.BlockSpec((lpad, kdim), lambda b, m: (b, 0)),       # whole image, VMEM-resident
                pl.BlockSpec((kh, kdim, oc), lambda b, m: (0, 0, 0)),  # all row-tap weights
                pl.BlockSpec((1, oc), lambda b, m: (0, 0)),
            ],
            out_specs=pl.BlockSpec((tm, oc), lambda b, m: (b * mblocks + m, 0)),
        ),
        compiler_params=pltpu.CompilerParams(
            dimension_semantics=("parallel", "arbitrary"),
            vmem_limit_bytes=_vmem_limit(block_bytes),
        ),
        cost_estimate=pl.CostEstimate(
            flops=int(flops), transcendentals=0, bytes_accessed=int(bytes_accessed)
        ),
    )(xf, prep["w"], prep["shift"])
    # TODO(synk): for very large images, switch the x BlockSpec to row strips so the
    # double-buffered block stays within v7x's 64 MiB VMEM.

    out = out.reshape(n, oh, ow8, oc)
    return out, ow


# ---------------------------------------------------------------------------
# Kernel 3: MaxPool2d(kernel=2, stride=2).
# Wrapper reshapes to (N, ho, 2, wo, 2*C) (contiguous, lane-dense last dim);
# kernel does the 2x2 max with plain value slicing (no strided ref indexing).
# ---------------------------------------------------------------------------
def _maxpool_kernel(x_ref, o_ref, *, c):
    x = x_ref[...]                                   # (1, tpr, 2, wo, 2*c)
    v = jnp.maximum(x[:, :, 0], x[:, :, 1])          # vertical max   -> (1, tpr, wo, 2*c)
    o_ref[...] = jnp.maximum(v[..., :c], v[..., c:])  # horizontal max -> (1, tpr, wo, c)


def maxpool2x2(x, valid_w=None):
    # x: (N, H, W, C); PyTorch MaxPool2d(2,2) floors -> drop odd tail row/col.
    # valid_w trims the implicit-conv width padding in the same slice.
    n, h, w, c = x.shape
    if valid_w is None:
        valid_w = w
    ho, wo = h // 2, valid_w // 2
    if (2 * ho != h) or (2 * wo != w):
        x = x[:, : 2 * ho, : 2 * wo, :]
    x6 = x.reshape(n, ho, 2, wo, 2 * c)

    tpr = min(8, ho)
    grid_r = pl.cdiv(ho, tpr)

    return pl.pallas_call(
        functools.partial(_maxpool_kernel, c=c),
        out_shape=jax.ShapeDtypeStruct((n, ho, wo, c), x.dtype),
        grid_spec=pltpu.PrefetchScalarGridSpec(
            num_scalar_prefetch=0,
            grid=(n, grid_r),
            in_specs=[pl.BlockSpec((1, tpr, 2, wo, 2 * c), lambda b, r: (b, r, 0, 0, 0))],
            out_specs=pl.BlockSpec((1, tpr, wo, c), lambda b, r: (b, r, 0, 0)),
        ),
        compiler_params=pltpu.CompilerParams(
            dimension_semantics=("parallel", "arbitrary"),
            vmem_limit_bytes=_vmem_limit(tpr * 2 * wo * 2 * c * 2 + tpr * wo * c * 2),
        ),
    )(x6)


# ---------------------------------------------------------------------------
# layer1: Conv2d(2->64, k=11, p=2) + BN(eval) + ReLU via im2col + fused matmul.
# ---------------------------------------------------------------------------
def conv1_bn_relu(x, prep):
    kh, kw, pad = prep["kh"], prep["kw"], prep["pad"]
    n, h, w, c = x.shape
    oh, ow = h + 2 * pad - kh + 1, w + 2 * pad - kw + 1
    k, kp = kh * kw * c, prep["kp"]

    xp = jnp.pad(x, ((0, 0), (pad, pad), (pad, pad), (0, 0))).astype(jnp.bfloat16)
    cols = [xp[:, i:i + oh, j:j + ow, :] for i in range(kh) for j in range(kw)]
    if kp > k:  # build the patch tensor already K-padded (single materialization)
        cols.append(jnp.zeros((n, oh, ow, kp - k), jnp.bfloat16))
    patches = jnp.concatenate(cols, axis=-1)

    y = matmul_bias(patches.reshape(n * oh * ow, kp), prep, relu=True,
                    out_dtype=jnp.bfloat16)
    return y.reshape(n, oh, ow, prep["n"])


# ---------------------------------------------------------------------------
# Parameter init (deterministic, synthetic) + one-time preprocessing.
# ---------------------------------------------------------------------------
def init_params(key, flat_features, num_classes=NUM_CLASSES):
    keys = iter(jax.random.split(key, 32))

    def conv_p(ic, oc, k):
        return dict(
            w=0.05 * jax.random.normal(next(keys), (oc, ic, k, k), jnp.float32),
            b=0.05 * jax.random.normal(next(keys), (oc,), jnp.float32),
            gamma=jax.random.uniform(next(keys), (oc,), jnp.float32, 0.5, 1.5),
            beta=0.1 * jax.random.normal(next(keys), (oc,), jnp.float32),
            mean=0.1 * jax.random.normal(next(keys), (oc,), jnp.float32),
            var=jax.random.uniform(next(keys), (oc,), jnp.float32, 0.5, 1.5),
        )

    def lin_p(fin, fout):
        return dict(
            w=(1.0 / jnp.sqrt(fin)) * jax.random.normal(next(keys), (fout, fin), jnp.float32),
            b=0.05 * jax.random.normal(next(keys), (fout,), jnp.float32),
        )

    return dict(
        layer1=conv_p(2, 64, 11),
        layer2=conv_p(64, 64, 7),
        layer3=conv_p(64, 32, 5),
        fc1=lin_p(flat_features, 5048),
        fc1a=lin_p(5048, 2048),
        fc2=lin_p(2048, 1024),
        fc3=lin_p(1024, num_classes),
    )


def prepare_params(params, conv3_hw):
    """One-time preprocessing: fold BN, transpose, permute fc1 rows, pad, cast bf16."""
    prep = {}

    # layer1: im2col conv; weight -> (kh*kw*ic, oc) * bn_scale; exact 64 output channels.
    p = params["layer1"]
    oc, ic, kh, kw = p["w"].shape
    s = p["gamma"] / jnp.sqrt(p["var"] + BN_EPS)
    wm = jnp.transpose(p["w"], (2, 3, 1, 0)).reshape(kh * kw * ic, oc) * s[None, :]
    shift = p["beta"] + (p["b"] - p["mean"]) * s
    prep["layer1"] = _prep_matmul(wm, shift, pad_n=False, tm_max=512, kh=kh, kw=kw, pad=2)

    # layer2/layer3: implicit conv; weight -> (kh, kw*ic, oc) * bn_scale (exact oc).
    for name in ("layer2", "layer3"):
        p = params[name]
        oc, ic, kh, kw = p["w"].shape
        s = p["gamma"] / jnp.sqrt(p["var"] + BN_EPS)
        wt = (jnp.transpose(p["w"], (2, 3, 1, 0)) * s).reshape(kh, kw * ic, oc)
        shift = (p["beta"] + (p["b"] - p["mean"]) * s).reshape(1, oc)
        prep[name] = dict(w=wt.astype(jnp.bfloat16), shift=shift.astype(jnp.float32),
                          kh=kh, kw=kw, pad=2, oc=oc, ic=ic)

    # fc1: permute rows from NCHW flatten order to NHWC flatten order (one-time).
    h3, w3 = conv3_hw
    c3 = params["layer3"]["w"].shape[0]
    p = params["fc1"]
    wt = p["w"].T.reshape(c3, h3, w3, -1).transpose(1, 2, 0, 3).reshape(c3 * h3 * w3, -1)
    prep["fc1"] = _prep_matmul(wt, p["b"])

    for name in ("fc1a", "fc2", "fc3"):
        p = params[name]
        prep[name] = _prep_matmul(p["w"].T, p["b"])
    return prep


# ---------------------------------------------------------------------------
# Full forward pass.
# ---------------------------------------------------------------------------
def convnet_forward(x_nchw, prep):
    x = jnp.transpose(x_nchw, (0, 2, 3, 1))            # NCHW in -> NHWC internally

    out = maxpool2x2(conv1_bn_relu(x, prep["layer1"]))
    out, vw = conv_bn_relu_implicit(out, prep["layer2"])
    out = maxpool2x2(out, valid_w=vw)
    out, vw = conv_bn_relu_implicit(out, prep["layer3"])
    out = maxpool2x2(out, valid_w=vw)
    # TODO(synk): F.dropout (training-mode default in the reference script) is
    # stochastic; implemented as identity (inference semantics).

    feats = out.reshape(out.shape[0], -1)               # NHWC flatten (fc1 rows pre-permuted)
    b = feats.shape[0]
    bp = max(8, _round_up(b, 8))
    if bp != b:
        feats = jnp.pad(feats, ((0, bp - b), (0, 0)))

    h = matmul_bias(feats, prep["fc1"], relu=True)
    h = matmul_bias(h, prep["fc1a"], relu=True)
    h = matmul_bias(h, prep["fc2"], relu=True)
    # TODO(synk): second F.dropout also treated as identity.
    logits = matmul_bias(h, prep["fc3"], relu=False, out_dtype=jnp.float32)
    return logits[:b]


if __name__ == "__main__":
    key = jax.random.PRNGKey(0)
    k_x, k_p = jax.random.split(key)

    # Small input consistent with the module: NCHW, 2 input channels.
    N, C, H, W = 2, 2, 32, 40
    x = jax.random.normal(k_x, (N, C, H, W), jnp.float32)

    # Derive flattened feature count for fc1 from the conv/pool chain.
    def conv_out(sz, k, p):
        return sz + 2 * p - k + 1

    h, w = H, W
    h, w = conv_out(h, 11, 2) // 2, conv_out(w, 11, 2) // 2   # layer1
    h, w = conv_out(h, 7, 2) // 2, conv_out(w, 7, 2) // 2     # layer2
    h, w = conv_out(h, 5, 2) // 2, conv_out(w, 5, 2) // 2     # layer3
    flat_features = 32 * h * w

    params = init_params(k_p, flat_features, NUM_CLASSES)
    prep = prepare_params(params, conv3_hw=(h, w))  # one-time: fold BN, permute, pad, bf16

    logits = convnet_forward(x, prep)
    jax.block_until_ready(logits)
    assert logits.shape == (N, NUM_CLASSES), logits.shape
    assert bool(jnp.all(jnp.isfinite(logits)))
    print("KERNEL_OK")
</pallas_src>

<mosaic_0001>
module attributes {stable_mosaic.version = 11 : i64} {
  func.func @_matmul_bias_kernel(%arg0: i32, %arg1: i32, %arg2: i32, %arg3: memref<512x256xbf16, #tpu.memory_space<vmem>>, %arg4: memref<256x64xbf16, #tpu.memory_space<vmem>>, %arg5: memref<1x64xf32, #tpu.memory_space<vmem>>, %arg6: memref<512x64xbf16, #tpu.memory_space<vmem>>, %arg7: memref<512x64xf32, #tpu.memory_space<vmem>>) attributes {dimension_semantics = [#tpu.dimension_semantics<parallel>, #tpu.dimension_semantics<parallel>, #tpu.dimension_semantics<arbitrary>], iteration_bounds = array<i64: 4, 1, 1>, scalar_prefetch = 0 : i64, scratch_operands = 1 : i64, tpu.core_type = #tpu.core_type<tc>, window_params = [{transform_indices = @transform_0, window_bounds = array<i64: 512, 256>}, {transform_indices = @transform_1, window_bounds = array<i64: 256, 64>}, {transform_indices = @transform_2, window_bounds = array<i64: 1, 64>}, {transform_indices = @transform_3, window_bounds = array<i64: 512, 64>}]} {
    %c0_i32 = arith.constant 0 : i32
    %0 = arith.cmpi eq, %arg2, %c0_i32 : i32
    %1 = arith.extui %0 : i1 to i32
    %c0_i32_0 = arith.constant 0 : i32
    %2 = arith.cmpi ne, %1, %c0_i32_0 : i32
    scf.if %2 {
      %cst_10 = arith.constant 0.000000e+00 : f32
      %12 = vector.broadcast %cst_10 : f32 to vector<512x64xf32>
      %c0_11 = arith.constant 0 : index
      %c0_12 = arith.constant 0 : index
      %13 = vector.load %arg7[%c0_11, %c0_12] : memref<512x64xf32, #tpu.memory_space<vmem>>, vector<512x64xf32>
      tpu.vector_store %arg7[%c0_11, %c0_12], %12 {strides = array<i32>} : memref<512x64xf32, #tpu.memory_space<vmem>>, vector<512x64xf32>,
    } else {
    }
    %c0 = arith.constant 0 : index
    %c0_1 = arith.constant 0 : index
    %3 = vector.load %arg7[%c0, %c0_1] : memref<512x64xf32, #tpu.memory_space<vmem>>, vector<512x64xf32>
    %c0_2 = arith.constant 0 : index
    %c0_3 = arith.constant 0 : index
    %4 = vector.load %arg3[%c0_2, %c0_3] : memref<512x256xbf16, #tpu.memory_space<vmem>>, vector<512x256xbf16>
    %c0_4 = arith.constant 0 : index
    %c0_5 = arith.constant 0 : index
    %5 = vector.load %arg4[%c0_4, %c0_5] : memref<256x64xbf16, #tpu.memory_space<vmem>>, vector<256x64xbf16>
    %cst = arith.constant dense<0.000000e+00> : vector<512x64xf32>
    %6 = tpu.matmul %4, %5, %cst {dimension_numbers = #tpu.dot_dimension_numbers<[1], [0], [0], [1], [0, 0, 1, 1], [], []>} : vector<512x256xbf16>, vector<256x64xbf16>, vector<512x64xf32> -> vector<512x64xf32>
    %7 = arith.addf %3, %6 : vector<512x64xf32>
    %c0_6 = arith.constant 0 : index
    %c0_7 = arith.constant 0 : index
    %8 = vector.load %arg7[%c0_6, %c0_7] : memref<512x64xf32, #tpu.memory_space<vmem>>, vector<512x64xf32>
    tpu.vector_store %arg7[%c0_6, %c0_7], %7 {strides = array<i32>} : memref<512x64xf32, #tpu.memory_space<vmem>>, vector<512x64xf32>,
    %c0_i32_8 = arith.constant 0 : i32
    %9 = arith.cmpi eq, %arg2, %c0_i32_8 : i32
    %10 = arith.extui %9 : i1 to i32
    %c0_i32_9 = arith.constant 0 : i32
    %11 = arith.cmpi ne, %10, %c0_i32_9 : i32
    scf.if %11 {
      %c0_10 = arith.constant 0 : index
      %c0_11 = arith.constant 0 : index
      %12 = vector.load %arg7[%c0_10, %c0_11] : memref<512x64xf32, #tpu.memory_space<vmem>>, vector<512x64xf32>
      %c0_12 = arith.constant 0 : index
      %c0_13 = arith.constant 0 : index
      %13 = vector.load %arg5[%c0_12, %c0_13] : memref<1x64xf32, #tpu.memory_space<vmem>>, vector<1x64xf32>
      %14 = vector.broadcast %13 : vector<1x64xf32> to vector<512x64xf32>
      %15 = arith.addf %12, %14 : vector<512x64xf32>
      %cst_14 = arith.constant 0.000000e+00 : f32
      %16 = vector.broadcast %cst_14 : f32 to vector<512x64xf32>
      %17 = arith.maximumf %15, %16 : vector<512x64xf32>
      %18 = arith.truncf %17 : vector<512x64xf32> to vector<512x64xbf16>
      %c0_15 = arith.constant 0 : index
      %c0_16 = arith.constant 0 : index
      %19 = vector.load %arg6[%c0_15, %c0_16] : memref<512x64xbf16, #tpu.memory_space<vmem>>, vector<512x64xbf16>
      tpu.vector_store %arg6[%c0_15, %c0_16], %18 {strides = array<i32>} : memref<512x64xbf16, #tpu.memory_space<vmem>>, vector<512x64xbf16>,
    } else {
    }
    return
  }
  func.func @transform_0(%arg0: i32, %arg1: i32, %arg2: i32) -> (i32, i32) {
    %c0_i32 = arith.constant 0 : i32
    return %arg0, %arg2 : i32, i32
  }
  func.func @transform_1(%arg0: i32, %arg1: i32, %arg2: i32) -> (i32, i32) {
    %c0_i32 = arith.constant 0 : i32
    return %arg2, %arg1 : i32, i32
  }
  func.func @transform_2(%arg0: i32, %arg1: i32, %arg2: i32) -> (i32, i32) {
    %c0_i32 = arith.constant 0 : i32
    %c0_i32_0 = arith.constant 0 : i32
    return %c0_i32, %arg1 : i32, i32
  }
  func.func @transform_3(%arg0: i32, %arg1: i32, %arg2: i32) -> (i32, i32) {
    %c0_i32 = arith.constant 0 : i32
    return %arg0, %arg1 : i32, i32
  }
}

</mosaic_0001>

<bundles_post_ra>
// kernel: tpu_custom_call.1
= control target key start
LH: loop header
LB: loop body
LE: loop exit
PB: predicated region body
PF: predicated region fallthrough
CT: control target
= control target key end

     0   :  { %8 = vsyncpa [#allocation4], 0  ;;  %s3927_s0 = inlined_call_operand.hbm [shape: bf16[1768,256], index: 0, kind: input, shape index: {}]   ;;  %s3928_s1 = inlined_call_operand.vmem [shape: bf16[256,64], index: 1, kind: input, shape index: {}]   ;;  %s3929_s2 = inlined_call_operand.vmem [shape: f32[1,64], index: 2, kind: input, shape index: {}]   ;;  %s3930_s3 = inlined_call_operand.vmem [shape: bf16[1768,64], index: 3, kind: output, shape index: {}]  }
   0x1   :  { %10 = vsyncpa [#allocation4 + $0x1], 0  ;;  %s3069_s12 = smov 0   ;;  %s3071_s13 = smov 0  }
   0x2   :  { %s3073_s14 = smov 0   ;;  %s3075_s15 = smov 0  }
   0x3   :  { %s3077_s16 = smov 0   ;;  %s3079_s17 = smov 0  }
   0x4 LB: > { %s2388_s18 = sadd.s32 4294967295, %s3010_s17   ;;  %s35_s19 = sadd.s32 1, %s3006_s16  ;;  %s3010_s17 = sphi %s3079_s17, %s16_s17   ;;  %s3006_s16 = sphi %s3077_s16, %s3940_s16   ;;  %s3002_s15 = sphi %s3075_s15, %s3939_s15   ;;  %s2998_s14 = sphi %s3073_s14, %s3938_s14   ;;  %s2994_s13 = sphi %s3071_s13, %s3937_s13   ;;  %s2990_s12 = sphi %s3069_s12, %s3936_s12  }
   0x5   : > { %p37_p0 = scmp.ge.s32.totalorder %s35_s19, 4  ;;  %s44_s20 = sadd.s32 1, %s2998_s14 }
   0x6   : > { %p51_p1 = scmp.ne.s32.totalorder %s2998_s14, %s2994_s13  ;;  %p52_p2 = scmp.eq.s32.totalorder %s3010_s17, 0 }
   0x7   : > { %s3942_s19 = smov (%p37_p0, %s35_s19), 0  ;;  %p57_p4 = scmp.ne.s32.totalorder %s2994_s13, %s2990_s12 }
   0x8   : > { %p53_p3 = por %p52_p2, %p51_p1  ;;  %s39_s21 = ssub.s32 %s3006_s16, %s3942_s19 }
   0x9   : > { %p58_p5 = scmp.eq.s32.totalorder %s2388_s18, 0  ;;  %p42_p6 = scmp.eq.s32.totalorder %s39_s21, 0 }
   0xa   : > { %p137_p7 = scmp.eq.s32.totalorder %s2388_s18, 3  ;;  %p2393_p10 = scmp.ge.s32.totalorder %s3010_s17, 4 }
   0xb   : > { %p3108_p8 = por %p58_p5, %p57_p4 }
   0xc   : > { %s3113_s23 = scalar_select %p42_p6, %s2998_s14, %s44_s20  }
   0xd   : > { %p3115_p9 = por %p137_p7, %p51_p1  ;;  %177 = sbr.rel (%p2393_p10) target bundleno = 55 (0x37), region = 24 }
  0x14   : > { %180 = sbr.rel (!%p53_p3) target bundleno = 55 (0x37), region = 28  ;;  %s181_s25 = sand.u32 (%p53_p3), 1, %s2998_s14  }
  0x15   : > { %s2395_s26 = sshll.u32 (%p53_p3), %s3006_s16, 6  ;;  %s2394_s27 = sshll.u32 (%p53_p3), %s181_s25, 9 }
  0x16   : > { %s188_s28 = ssub.s32 (%p53_p3), 221, %s2395_s26  ;;  %s3125_s4 = scalar_lea.sflag (%p53_p3), [#allocation4], %s181_s25 }
  0x17   : > { %p189_p11 = scmp.lt.s32.totalorder (%p53_p3), %s188_s28, 64  ;;  %s185_s5 = scalar_lea.vmem (%p53_p3), [#allocation3], %s2394_s27 }
  0x1b   : > { %s3944_s28 = smov (!%p189_p11, %s188_s28), 64 }
  0x1c   : > { %s3122_s29 = sshll.u32 %s3944_s28, 7 }
  0x1d   : > { %s194_s30 = ssub.s32 8192, %s3122_s29 }
  0x1e   : > { %195 = vsyncadd %s3125_s4, %s194_s30  ;;  %p2398_p12 = scmp.ne.s32.totalorder %s3122_s29, 0  ;;  %s2570_s6 = sshll.u32 %s3006_s16, 13 }
  0x1f   : > { %s3133_s9 = scalar_lea.hbm %s3927_s0, %s2570_s6  ;;  %s202_s10 = sshll.u32 %s185_s5, 4  ;;  %s3135_s10 = int_to_ptr.vmem [resolvable:$true] %s202_s10 }
  0x20   : > { %s2900_s11 = scalar_lea.hbm %s3133_s9, %s3122_s29  ;;  %s2904_s20 = scalar_lea.hbm %s3927_s0, 28288 }
  0x21   : > { %p2901_p13 = scmp.ne.s32.totalorder %s3133_s9, %s2900_s11  ;;  %p2905_p2 = scmp.lt.u32.totalorder %s3133_s9, %s3927_s0 }
  0x22   : > { %p2906_p3 = scmp.lt.u32.totalorder %s2904_s20, %s2900_s11  ;;  %p2908_p5 = scmp.lt.u32.totalorder %s2900_s11, %s3133_s9 }
  0x23   : > { %p2902_p0 = pnand %p2901_p13, %p2398_p12 }
  0x24   : > { %p2907_p4 = por %p2906_p3, %p2905_p2 }
  0x25   : > { %p2903_p1 = pneg %p2902_p0 }
  0x26   : > { %p2909_p6 = por %p2908_p5, %p2907_p4 }
  0x28   : > { %p2910_p7 = pnand %p2909_p6, %p2903_p1 }
  0x2a   : > { %2913 = shalt.err (!%p2910_p7)
}
  0x2b   : > { %s2914_s26 = scalar_lea.vmem %s3135_s10, %s3122_s29  ;;  %s3044_s27 = smov [#allocation3]  }
  0x2c   : > { %p2915_p10 = scmp.ne.s32.totalorder %s3135_s10, %s2914_s26  ;;  %s2918_s28 = sshll.u32 %s3044_s27, 4  ;;  %s2919_s28 = int_to_ptr.vmem [resolvable:$false] %s2918_s28 }
  0x2d   : > { %s2920_s30 = scalar_lea.vmem %s2919_s28, 16384  ;;  %p2921_p0 = scmp.lt.s32.totalorder %s3135_s10, %s2919_s28 }
  0x2e   : > { %p2916_p11 = pnand %p2915_p10, %p2398_p12  ;;  %p2922_p2 = scmp.lt.s32.totalorder %s2920_s30, %s2914_s26 }
  0x30   : > { %p2917_p13 = pneg %p2916_p11  ;;  %p2923_p3 = por %p2922_p2, %p2921_p0 }
  0x32   : > { %p2924_p4 = pnand %p2923_p3, %p2917_p13 }
  0x34   : > { %2927 = shalt.err (!%p2924_p4)
}
  0x35   : > { %s3045_s5 = smov 128   ;;  %s3046_s6 = smov 8  }
  0x36   : > { %208 = dma.hbm_to_vmem [thread:$0]  (%p2398_p12), %s3133_s9, %s3122_s29, %s3135_s10, %s3125_s4, %s3045_s5, %s3045_s5, %s3046_s6  }
  0x37 PF: > { %p2403_p1 = scmp.ge.s32.totalorder %s3010_s17, 1  ;;  %p210_p5 = scmp.lt.s32.totalorder %s3010_s17, 5 }
  0x39   : > { %p211_p6 = pnand %p2403_p1, %p210_p5 }
  0x3a   : > { %s3165_s7 = sand.u32 (!%p211_p6), 1, %s2994_s13  }
  0x3b   : > { %214 = sbr.rel (%p211_p6) target bundleno = 577 (0x241), region = 32  ;;  %s2404_s8 = sshll.u32 (!%p211_p6), %s3165_s7, 9 }
  0x3c   : > { %s217_s11 = scalar_lea.sflag (!%p211_p6), [#allocation4], %s3165_s7  ;;  %s3169_s12 = scalar_lea.vmem (!%p211_p6), [#allocation3], %s2404_s8 }
  0x42   : > { %2985 = dma.done.wait (%p3108_p8), %s217_s11, 8192  }
  0x43   : > { %2987 = vsyncadd (%p3108_p8), %s217_s11, 4294959104  ;;  %v3047_v0 = vmov 0   ;;  %v2787_v1 = vld [vmem:[%s3928_s1] sm:$0xff]   ;;  %v2788_v2 = vld [vmem:[%s3928_s1 + $0x8] sm:$0xff]   ;;  %vm282_vm0 = vcmask 523264   ;;  %v3048_v19 = vmov 0.0  }
  0x44   : > { %923 = vmatprep.subr.bf16.mxu0 %v3047_v0  ;;  %2638 = vmatprep.subr.bf16.mxu1 %v3047_v0  ;;  %v2789_v3 = vld [vmem:[%s3928_s1 + $0x10] sm:$0xff]   ;;  %v2790_v4 = vld [vmem:[%s3928_s1 + $0x18] sm:$0xff]   ;;  %v2791_v5 = vld [vmem:[%s3928_s1 + $0x20] sm:$0xff]   ;;  %283 = vst.msk [vmem:[#allocation2] sm:$0xff] %vm282_vm0, %v3048_v19  ;;  %s2405_s11 = sshll.u32 %s3165_s7, 8  ;;  %vm1799_vm1 = vcmask 519168  }
  0x45   : > { %924 = vmatpush1.bf16.msra.mxu0 %v2787_v1  ;;  %2654 = vmatpush1.bf16.msra.mxu1 %v2787_v1  ;;  %v2805_v6 = vld [vmem:[%s3169_s12 + $0x4] ss:$8 sps:$4 sm:$0xff]   ;;  %v2793_v9 = vld [vmem:[%s3928_s1 + $0x30] sm:$0xff]   ;;  %v2794_v10 = vld [vmem:[%s3928_s1 + $0x38] sm:$0xff]   ;;  %284 = vst.msk [vmem:[#allocation2 + $0x8] sm:$0xff] %vm282_vm0, %v3048_v19  ;;  %s3469_s7 = scalar_lea.vmem [#allocation5], %s2405_s11  }
  0x46   : > { %925 = vmatprep.subr.bf16.mxu0 %v3047_v0  ;;  %2639 = vmatprep.subr.bf16.mxu1 %v3047_v0  ;;  %v2792_v7 = vld [vmem:[%s3928_s1 + $0x28] sm:$0xff]   ;;  %v2795_v11 = vld [vmem:[%s3928_s1 + $0x40] sm:$0xff]   ;;  %v2797_v13 = vld [vmem:[%s3928_s1 + $0x50] sm:$0xff]   ;;  %285 = vst.msk [vmem:[#allocation2 + $0x10] sm:$0xff] %vm282_vm0, %v3048_v19  ;;  %s2552_s9 = sshll.u32 (%p3115_p9), %s3002_s15, 6  ;;  %s2635_s10 = sshll.u32 (%p3115_p9), %s3002_s15, 8 }
  0x47   : > { %v2808_v8 = vld [vmem:[%s3169_s12 + $0x104] ss:$8 sps:$4 sm:$0xff]   ;;  %955 = vmatprep.mubr.bf16.mxu0 %v2805_v6  ;;  %v2798_v14 = vld [vmem:[%s3928_s1 + $0x58] sm:$0xff]   ;;  %v2801_v17 = vld [vmem:[%s3928_s1 + $0x70] sm:$0xff]   ;;  %286 = vst.msk [vmem:[#allocation2 + $0x18] sm:$0xff] %vm282_vm0, %v3048_v19  ;;  %s1872_s22 = ssub.s32 (%p3115_p9), 221, %s2552_s9  ;;  %s3727_s21 = scalar_lea.vmem (%p3115_p9), %s3930_s3, %s2635_s10  }
  0x48   : > { %1083 = vmatprep.mubr.bf16.mxu1 %v2808_v8  ;;  %v2796_v12 = vld [vmem:[%s3928_s1 + $0x48] sm:$0xff]   ;;  %v2799_v15 = vld [vmem:[%s3928_s1 + $0x60] sm:$0xff]   ;;  %v3255_v18 = vld [vmem:[%s3928_s1 + $0x78] sm:$0xff]   ;;  %287 = vst.msk [vmem:[#allocation2 + $0x20] sm:$0xff] %vm282_vm0, %v3048_v19  ;;  %p1873_p8 = scmp.lt.s32.totalorder (%p3115_p9), %s1872_s22, 64 }
  0x49   : > { %926 = vmatpush1.bf16.msra.mxu0 %v2788_v2  ;;  %2655 = vmatpush1.bf16.msra.mxu1 %v2788_v2  ;;  %v2800_v16 = vld [vmem:[%s3928_s1 + $0x68] sm:$0xff]   ;;  %288 = vst.msk [vmem:[#allocation2 + $0x28] sm:$0xff] %vm282_vm0, %v3048_v19  ;;  %289 = vst.msk [vmem:[#allocation2 + $0x30] sm:$0xff] %vm282_vm0, %v3048_v19  ;;  %v2809_v22 = vld [vmem:[%s3169_s12 + $0x14] ss:$8 sps:$4 sm:$0xff]  }
  0x4a   : > { %927 = vmatprep.subr.bf16.mxu0 %v3047_v0  ;;  %2640 = vmatprep.subr.bf16.mxu1 %v3047_v0  ;;  %290 = vst.msk [vmem:[#allocation2 + $0x38] sm:$0xff] %vm282_vm0, %v3048_v19  ;;  %291 = vst.msk [vmem:[#allocation2 + $0x40] sm:$0xff] %vm282_vm0, %v3048_v19  ;;  %v2803_v20 = vld [vmem:[%s3169_s12] ss:$8 sps:$4 sm:$0xff]   ;;  %v2811_v23 = vld [vmem:[%s3169_s12 + $0x114] ss:$8 sps:$4 sm:$0xff]  }
  0x4b   : > { %292 = vst.msk [vmem:[#allocation2 + $0x48] sm:$0xff] %vm282_vm0, %v3048_v19  ;;  %293 = vst.msk [vmem:[#allocation2 + $0x50] sm:$0xff] %vm282_vm0, %v3048_v19  ;;  %v2806_v21 = vld [vmem:[%s3169_s12 + $0x100] ss:$8 sps:$4 sm:$0xff]   ;;  %v2813_v24 = vld [vmem:[%s3169_s12 + $0x10] ss:$8 sps:$4 sm:$0xff]  }
  0x4c   : > { %294 = vst.msk [vmem:[#allocation2 + $0x58] sm:$0xff] %vm282_vm0, %v3048_v19  ;;  %295 = vst.msk [vmem:[#allocation2 + $0x60] sm:$0xff] %vm282_vm0, %v3048_v19  ;;  %v2814_v25 = vld [vmem:[%s3169_s12 + $0x110] ss:$8 sps:$4 sm:$0xff]   ;;  %v2815_v26 = vld [vmem:[%s3169_s12 + $0x24] ss:$8 sps:$4 sm:$0xff]  }
  0x4d   : > { %928 = vmatpush1.bf16.msra.mxu0 %v2789_v3  ;;  %2656 = vmatpush1.bf16.msra.mxu1 %v2789_v3  ;;  %296 = vst.msk [vmem:[#allocation2 + $0x68] sm:$0xff] %vm282_vm0, %v3048_v19  ;;  %297 = vst.msk [vmem:[#allocation2 + $0x70] sm:$0xff] %vm282_vm0, %v3048_v19  ;;  %v2817_v27 = vld [vmem:[%s3169_s12 + $0x124] ss:$8 sps:$4 sm:$0xff]   ;;  %v2819_v28 = vld [vmem:[%s3169_s12 + $0x20] ss:$8 sps:$4 sm:$0xff]  }
  0x4e   : > { %929 = vmatprep.subr.bf16.mxu0 %v3047_v0  ;;  %2641 = vmatprep.subr.bf16.mxu1 %v3047_v0  ;;  %298 = vst.msk [vmem:[#allocation2 + $0x78] sm:$0xff] %vm282_vm0, %v3048_v19  ;;  %299 = vst.msk [vmem:[#allocation2 + $0x80] sm:$0xff] %vm282_vm0, %v3048_v19  ;;  %v2820_v29 = vld [vmem:[%s3169_s12 + $0x120] ss:$8 sps:$4 sm:$0xff]   ;;  %v2821_v30 = vld [vmem:[%s3169_s12 + $0x34] ss:$8 sps:$4 sm:$0xff]  }
  0x4f   : > { %300 = vst.msk [vmem:[#allocation2 + $0x88] sm:$0xff] %vm282_vm0, %v3048_v19  ;;  %301 = vst.msk [vmem:[#allocation2 + $0x90] sm:$0xff] %vm282_vm0, %v3048_v19  ;;  %v2823_v31 = vld [vmem:[%s3169_s12 + $0x134] ss:$8 sps:$4 sm:$0xff]   ;;  %v2825_v32 = vld [vmem:[%s3169_s12 + $0x30] ss:$8 sps:$4 sm:$0xff]  }
  0x50   : > { %302 = vst.msk [vmem:[#allocation2 + $0x98] sm:$0xff] %vm282_vm0, %v3048_v19  ;;  %303 = vst.msk [vmem:[#allocation2 + $0xa0] sm:$0xff] %vm282_vm0, %v3048_v19  ;;  %v2826_v33 = vld [vmem:[%s3169_s12 + $0x130] ss:$8 sps:$4 sm:$0xff]   ;;  %v2827_v34 = vld [vmem:[%s3169_s12 + $0x44] ss:$8 sps:$4 sm:$0xff]  }
  0x51   : > { %930 = vmatpush1.bf16.msra.mxu0 %v2790_v4  ;;  %2657 = vmatpush1.bf16.msra.mxu1 %v2790_v4  ;;  %304 = vst.msk [vmem:[#allocation2 + $0xa8] sm:$0xff] %vm282_vm0, %v3048_v19  ;;  %305 = vst.msk [vmem:[#allocation2 + $0xb0] sm:$0xff] %vm282_vm0, %v3048_v19  ;;  %v2829_v35 = vld [vmem:[%s3169_s12 + $0x144] ss:$8 sps:$4 sm:$0xff]   ;;  %v2831_v36 = vld [vmem:[%s3169_s12 + $0x40] ss:$8 sps:$4 sm:$0xff]  }
  0x52   : > { %931 = vmatprep.subr.bf16.mxu0 %v3047_v0  ;;  %2642 = vmatprep.subr.bf16.mxu1 %v3047_v0  ;;  %306 = vst.msk [vmem:[#allocation2 + $0xb8] sm:$0xff] %vm282_vm0, %v3048_v19  ;;  %307 = vst.msk [vmem:[#allocation2 + $0xc0] sm:$0xff] %vm282_vm0, %v3048_v19  ;;  %v2832_v37 = vld [vmem:[%s3169_s12 + $0x140] ss:$8 sps:$4 sm:$0xff]   ;;  %v2833_v38 = vld [vmem:[%s3169_s12 + $0x54] ss:$8 sps:$4 sm:$0xff]  }
  0x53   : > { %308 = vst.msk [vmem:[#allocation2 + $0xc8] sm:$0xff] %vm282_vm0, %v3048_v19  ;;  %309 = vst.msk [vmem:[#allocation2 + $0xd0] sm:$0xff] %vm282_vm0, %v3048_v19  ;;  %v2835_v39 = vld [vmem:[%s3169_s12 + $0x154] ss:$8 sps:$4 sm:$0xff]   ;;  %v2837_v40 = vld [vmem:[%s3169_s12 + $0x50] ss:$8 sps:$4 sm:$0xff]  }
  0x54   : > { %310 = vst.msk [vmem:[#allocation2 + $0xd8] sm:$0xff] %vm282_vm0, %v3048_v19  ;;  %311 = vst.msk [vmem:[#allocation2 + $0xe0] sm:$0xff] %vm282_vm0, %v3048_v19  ;;  %v2838_v41 = vld [vmem:[%s3169_s12 + $0x150] ss:$8 sps:$4 sm:$0xff]   ;;  %v2839_v42 = vld [vmem:[%s3169_s12 + $0x64] ss:$8 sps:$4 sm:$0xff]  }
  0x55   : > { %932 = vmatpush1.bf16.msra.mxu0 %v2791_v5  ;;  %2658 = vmatpush1.bf16.msra.mxu1 %v2791_v5  ;;  %312 = vst.msk [vmem:[#allocation2 + $0xe8] sm:$0xff] %vm282_vm0, %v3048_v19  ;;  %313 = vst.msk [vmem:[#allocation2 + $0xf0] sm:$0xff] %vm282_vm0, %v3048_v19  ;;  %v2841_v43 = vld [vmem:[%s3169_s12 + $0x164] ss:$8 sps:$4 sm:$0xff]   ;;  %v2843_v44 = vld [vmem:[%s3169_s12 + $0x60] ss:$8 sps:$4 sm:$0xff]  }
  0x56   : > { %933 = vmatprep.subr.bf16.mxu0 %v3047_v0  ;;  %2643 = vmatprep.subr.bf16.mxu1 %v3047_v0  ;;  %314 = vst.msk [vmem:[#allocation2 + $0xf8] sm:$0xff] %vm282_vm0, %v3048_v19  ;;  %315 = vst.msk [vmem:[#allocation2 + $0x100] sm:$0xff] %vm282_vm0, %v3048_v19  ;;  %v2844_v45 = vld [vmem:[%s3169_s12 + $0x160] ss:$8 sps:$4 sm:$0xff]   ;;  %v2845_v46 = vld [vmem:[%s3169_s12 + $0x74] ss:$8 sps:$4 sm:$0xff]  }
  0x57   : > { %316 = vst.msk [vmem:[#allocation2 + $0x108] sm:$0xff] %vm282_vm0, %v3048_v19  ;;  %317 = vst.msk [vmem:[#allocation2 + $0x110] sm:$0xff] %vm282_vm0, %v3048_v19  ;;  %v2847_v47 = vld [vmem:[%s3169_s12 + $0x174] ss:$8 sps:$4 sm:$0xff]   ;;  %v2849_v48 = vld [vmem:[%s3169_s12 + $0x70] ss:$8 sps:$4 sm:$0xff]  }
  0x58   : > { %318 = vst.msk [vmem:[#allocation2 + $0x118] sm:$0xff] %vm282_vm0, %v3048_v19  ;;  %319 = vst.msk [vmem:[#allocation2 + $0x120] sm:$0xff] %vm282_vm0, %v3048_v19  ;;  %v2850_v49 = vld [vmem:[%s3169_s12 + $0x170] ss:$8 sps:$4 sm:$0xff]   ;;  %v2851_v50 = vld [vmem:[%s3169_s12 + $0x84] ss:$8 sps:$4 sm:$0xff]  }
  0x59   : > { %934 = vmatpush1.bf16.msra.mxu0 %v2792_v7  ;;  %2659 = vmatpush1.bf16.msra.mxu1 %v2792_v7  ;;  %320 = vst.msk [vmem:[#allocation2 + $0x128] sm:$0xff] %vm282_vm0, %v3048_v19  ;;  %321 = vst.msk [vmem:[#allocation2 + $0x130] sm:$0xff] %vm282_vm0, %v3048_v19  ;;  %v2853_v51 = vld [vmem:[%s3169_s12 + $0x184] ss:$8 sps:$4 sm:$0xff]   ;;  %v2855_v52 = vld [vmem:[%s3169_s12 + $0x80] ss:$8 sps:$4 sm:$0xff]  }
  0x5a   : > { %935 = vmatprep.subr.bf16.mxu0 %v3047_v0  ;;  %2644 = vmatprep.subr.bf16.mxu1 %v3047_v0  ;;  %322 = vst.msk [vmem:[#allocation2 + $0x138] sm:$0xff] %vm282_vm0, %v3048_v19  ;;  %323 = vst.msk [vmem:[#allocation2 + $0x140] sm:$0xff] %vm282_vm0, %v3048_v19  ;;  %v2856_v53 = vld [vmem:[%s3169_s12 + $0x180] ss:$8 sps:$4 sm:$0xff]   ;;  %v2857_v54 = vld [vmem:[%s3169_s12 + $0x94] ss:$8 sps:$4 sm:$0xff]  }
  0x5b   : > { %324 = vst.msk [vmem:[#allocation2 + $0x148] sm:$0xff] %vm282_vm0, %v3048_v19  ;;  %325 = vst.msk [vmem:[#allocation2 + $0x150] sm:$0xff] %vm282_vm0, %v3048_v19  ;;  %v2859_v55 = vld [vmem:[%s3169_s12 + $0x194] ss:$8 sps:$4 sm:$0xff]   ;;  %v2861_v56 = vld [vmem:[%s3169_s12 + $0x90] ss:$8 sps:$4 sm:$0xff]  }
  0x5c   : > { %326 = vst.msk [vmem:[#allocation2 + $0x158] sm:$0xff] %vm282_vm0, %v3048_v19  ;;  %327 = vst.msk [vmem:[#allocation2 + $0x160] sm:$0xff] %vm282_vm0, %v3048_v19  ;;  %v2862_v57 = vld [vmem:[%s3169_s12 + $0x190] ss:$8 sps:$4 sm:$0xff]   ;;  %v2863_v58 = vld [vmem:[%s3169_s12 + $0xa4] ss:$8 sps:$4 sm:$0xff]  }
  0x5d   : > { %936 = vmatpush1.bf16.msra.mxu0 %v2793_v9  ;;  %2660 = vmatpush1.bf16.msra.mxu1 %v2793_v9  ;;  %328 = vst.msk [vmem:[#allocation2 + $0x168] sm:$0xff] %vm282_vm0, %v3048_v19  ;;  %329 = vst.msk [vmem:[#allocation2 + $0x170] sm:$0xff] %vm282_vm0, %v3048_v19  ;;  %v2865_v59 = vld [vmem:[%s3169_s12 + $0x1a4] ss:$8 sps:$4 sm:$0xff]   ;;  %v2867_v60 = vld [vmem:[%s3169_s12 + $0xa0] ss:$8 sps:$4 sm:$0xff]  }
  0x5e   : > { %937 = vmatprep.subr.bf16.mxu0 %v3047_v0  ;;  %2645 = vmatprep.subr.bf16.mxu1 %v3047_v0  ;;  %330 = vst.msk [vmem:[#allocation2 + $0x178] sm:$0xff] %vm282_vm0, %v3048_v19  ;;  %331 = vst.msk [vmem:[#allocation2 + $0x180] sm:$0xff] %vm282_vm0, %v3048_v19  ;;  %v2868_v61 = vld [vmem:[%s3169_s12 + $0x1a0] ss:$8 sps:$4 sm:$0xff]   ;;  %v2869_v62 = vld [vmem:[%s3169_s12 + $0xb4] ss:$8 sps:$4 sm:$0xff]  }
  0x5f   : > { %332 = vst.msk [vmem:[#allocation2 + $0x188] sm:$0xff] %vm282_vm0, %v3048_v19  ;;  %333 = vst.msk [vmem:[#allocation2 + $0x190] sm:$0xff] %vm282_vm0, %v3048_v19  ;;  %v2871_v63 = vld [vmem:[%s3169_s12 + $0x1b4] ss:$8 sps:$4 sm:$0xff]   ;;  %v2874_v1 = vld [vmem:[%s3169_s12 + $0x1b0] ss:$8 sps:$4 sm:$0xff]  }
  0x60   : > { %334 = vst.msk [vmem:[#allocation2 + $0x198] sm:$0xff] %vm282_vm0, %v3048_v19  ;;  %335 = vst.msk [vmem:[#allocation2 + $0x1a0] sm:$0xff] %vm282_vm0, %v3048_v19  ;;  %v2875_v2 = vld [vmem:[%s3169_s12 + $0xc4] ss:$8 sps:$4 sm:$0xff]   ;;  %v2879_v4 = vld [vmem:[%s3169_s12 + $0xc0] ss:$8 sps:$4 sm:$0xff]  }
  0x61   : > { %938 = vmatpush1.bf16.msra.mxu0 %v2794_v10  ;;  %2661 = vmatpush1.bf16.msra.mxu1 %v2794_v10  ;;  %336 = vst.msk [vmem:[#allocation2 + $0x1a8] sm:$0xff] %vm282_vm0, %v3048_v19  ;;  %337 = vst.msk [vmem:[#allocation2 + $0x1b0] sm:$0xff] %vm282_vm0, %v3048_v19  ;;  %v2877_v3 = vld [vmem:[%s3169_s12 + $0x1c4] ss:$8 sps:$4 sm:$0xff]   ;;  %v2880_v5 = vld [vmem:[%s3169_s12 + $0x1c0] ss:$8 sps:$4 sm:$0xff]  }
  0x62   : > { %939 = vmatprep.subr.bf16.mxu0 %v3047_v0  ;;  %2646 = vmatprep.subr.bf16.mxu1 %v3047_v0  ;;  %338 = vst.msk [vmem:[#allocation2 + $0x1b8] sm:$0xff] %vm282_vm0, %v3048_v19  ;;  %339 = vst.msk [vmem:[#allocation2 + $0x1c0] sm:$0xff] %vm282_vm0, %v3048_v19  ;;  %v2881_v6 = vld [vmem:[%s3169_s12 + $0xd4] ss:$8 sps:$4 sm:$0xff]   ;;  %v2885_v8 = vld [vmem:[%s3169_s12 + $0xd0] ss:$8 sps:$4 sm:$0xff]  }
  0x63   : > { %340 = vst.msk [vmem:[#allocation2 + $0x1c8] sm:$0xff] %vm282_vm0, %v3048_v19  ;;  %341 = vst.msk [vmem:[#allocation2 + $0x1d0] sm:$0xff] %vm282_vm0, %v3048_v19  ;;  %v2883_v7 = vld [vmem:[%s3169_s12 + $0x1d4] ss:$8 sps:$4 sm:$0xff]   ;;  %v2886_v9 = vld [vmem:[%s3169_s12 + $0x1d0] ss:$8 sps:$4 sm:$0xff]  }
  0x64   : > { %342 = vst.msk [vmem:[#allocation2 + $0x1d8] sm:$0xff] %vm282_vm0, %v3048_v19  ;;  %343 = vst.msk [vmem:[#allocation2 + $0x1e0] sm:$0xff] %vm282_vm0, %v3048_v19  ;;  %v2887_v10 = vld [vmem:[%s3169_s12 + $0xe4] ss:$8 sps:$4 sm:$0xff]  }
  0x65   : > { %940 = vmatpush1.bf16.msra.mxu0 %v2795_v11  ;;  %2662 = vmatpush1.bf16.msra.mxu1 %v2795_v11  ;;  %344 = vst.msk [vmem:[#allocation2 + $0x1e8] sm:$0xff] %vm282_vm0, %v3048_v19  ;;  %345 = vst.msk [vmem:[#allocation2 + $0x1f0] sm:$0xff] %vm282_vm0, %v3048_v19  ;;  %v2889_v11 = vld [vmem:[%s3169_s12 + $0x1e4] ss:$8 sps:$4 sm:$0xff]  }
  0x66   : > { %941 = vmatprep.subr.bf16.mxu0 %v3047_v0  ;;  %2647 = vmatprep.subr.bf16.mxu1 %v3047_v0  ;;  %346 = vst.msk [vmem:[#allocation2 + $0x1f8] sm:$0xff] %vm282_vm0, %v3048_v19  ;;  %v379_v19 = vld [vmem:[#allocation2 + $0x100] sm:$0xff] }
  0x69   : > { %942 = vmatpush1.bf16.msra.mxu0 %v2796_v12  ;;  %2663 = vmatpush1.bf16.msra.mxu1 %v2796_v12  ;;  %v2891_v12 = vld [vmem:[%s3169_s12 + $0xe0] ss:$8 sps:$4 sm:$0xff]  }
  0x6a   : > { %943 = vmatprep.subr.bf16.mxu0 %v3047_v0  ;;  %2648 = vmatprep.subr.bf16.mxu1 %v3047_v0 }
  0x6d   : > { %944 = vmatpush1.bf16.msra.mxu0 %v2797_v13  ;;  %2664 = vmatpush1.bf16.msra.mxu1 %v2797_v13  ;;  %v2892_v13 = vld [vmem:[%s3169_s12 + $0x1e0] ss:$8 sps:$4 sm:$0xff]  }
  0x6e   : > { %945 = vmatprep.subr.bf16.mxu0 %v3047_v0  ;;  %2649 = vmatprep.subr.bf16.mxu1 %v3047_v0 }
  0x71   : > { %946 = vmatpush1.bf16.msra.mxu0 %v2798_v14  ;;  %2665 = vmatpush1.bf16.msra.mxu1 %v2798_v14  ;;  %v2893_v14 = vld [vmem:[%s3169_s12 + $0xf4] ss:$8 sps:$4 sm:$0xff]  }
  0x72   : > { %947 = vmatprep.subr.bf16.mxu0 %v3047_v0  ;;  %2650 = vmatprep.subr.bf16.mxu1 %v3047_v0 }
  0x75   : > { %948 = vmatpush1.bf16.msra.mxu0 %v2799_v15  ;;  %2666 = vmatpush1.bf16.msra.mxu1 %v2799_v15  ;;  %v2895_v15 = vld [vmem:[%s3169_s12 + $0x1f4] ss:$8 sps:$4 sm:$0xff]  }
  0x76   : > { %949 = vmatprep.subr.bf16.mxu0 %v3047_v0  ;;  %2651 = vmatprep.subr.bf16.mxu1 %v3047_v0 }
  0x79   : > { %950 = vmatpush1.bf16.msra.mxu0 %v2800_v16  ;;  %2667 = vmatpush1.bf16.msra.mxu1 %v2800_v16  ;;  %v2897_v16 = vld [vmem:[%s3169_s12 + $0xf0] ss:$8 sps:$4 sm:$0xff]  }
  0x7a   : > { %951 = vmatprep.subr.bf16.mxu0 %v3047_v0  ;;  %2652 = vmatprep.subr.bf16.mxu1 %v3047_v0 }
  0x7d   : > { %952 = vmatpush1.bf16.msra.mxu0 %v2801_v17  ;;  %2668 = vmatpush1.bf16.msra.mxu1 %v2801_v17  ;;  %v2898_v17 = vld [vmem:[%s3169_s12 + $0x1f0] ss:$8 sps:$4 sm:$0xff]  }
  0x7e   : > { %953 = vmatprep.subr.bf16.mxu0 %v3047_v0  ;;  %2653 = vmatprep.subr.bf16.mxu1 %v3047_v0  ;;  %v2873_v0 = vld [vmem:[%s3169_s12 + $0xb0] ss:$8 sps:$4 sm:$0xff]  }
  0x81   : > { %954 = vmatpush1.bf16.msra.mxu0 %v3255_v18  ;;  %2669 = vmatpush1.bf16.msra.mxu1 %v3255_v18  ;;  %v347_v18 = vld [vmem:[#allocation2] sm:$0xff] }
  0x84   : > { %956 = vmatmul.mubr.bf16.vlgmr.msra.gmra.mrb[0].mxu0 %v2803_v20  ;;  %1084 = vmatmul.mubr.bf16.vlgmr.msra.gmra.mrb[0].mxu1 %v2806_v21 }
  0x85   : > { %963 = vmatprep.mubr.bf16.mxu0 %v2809_v22  ;;  %1091 = vmatprep.mubr.bf16.mxu1 %v2811_v23  ;;  %v348_v22 = vld [vmem:[#allocation2 + $0x8] sm:$0xff] }
  0x86   : > { %v380_v23 = vld [vmem:[#allocation2 + $0x108] sm:$0xff] }
  0x8c   : > { %964 = vmatmul.mubr.bf16.gmra.mrb[4].mxu0 %v2813_v24  ;;  %1092 = vmatmul.mubr.bf16.gmra.mrb[4].mxu1 %v2814_v25 }
  0x8d   : > { %971 = vmatprep.mubr.bf16.mxu0 %v2815_v26  ;;  %1099 = vmatprep.mubr.bf16.mxu1 %v2817_v27 }
  0x94   : > { %972 = vmatmul.mubr.bf16.gmra.mrb[8].mxu0 %v2819_v28  ;;  %1100 = vmatmul.mubr.bf16.gmra.mrb[8].mxu1 %v2820_v29 }
  0x95   : > { %979 = vmatprep.mubr.bf16.mxu0 %v2821_v30  ;;  %1107 = vmatprep.mubr.bf16.mxu1 %v2823_v31 }
  0x9c   : > { %980 = vmatmul.mubr.bf16.gmra.mrb[12].mxu0 %v2825_v32  ;;  %1108 = vmatmul.mubr.bf16.gmra.mrb[12].mxu1 %v2826_v33 }
  0x9d   : > { %987 = vmatprep.mubr.bf16.mxu0 %v2827_v34  ;;  %1115 = vmatprep.mubr.bf16.mxu1 %v2829_v35  ;;  %v349_v34 = vld [vmem:[#allocation2 + $0x10] sm:$0xff] }
  0x9e   : > { %v381_v35 = vld [vmem:[#allocation2 + $0x110] sm:$0xff] }
  0xa4   : > { %988 = vmatmul.mubr.bf16.gmra.mrb[16].mxu0 %v2831_v36  ;;  %1116 = vmatmul.mubr.bf16.gmra.mrb[16].mxu1 %v2832_v37  ;;  %v3458_v36 = vld [vmem:[%s3929_s2] ss:$0 sm:$0xff] }
  0xa5   : > { %995 = vmatprep.mubr.bf16.mxu0 %v2833_v38  ;;  %1123 = vmatprep.mubr.bf16.mxu1 %v2835_v39  ;;  %v350_v39 = vld [vmem:[#allocation2 + $0x18] sm:$0xff] }
  0xac   : > { %996 = vmatmul.mubr.bf16.gmra.mrb[20].mxu0 %v2837_v40  ;;  %1124 = vmatmul.mubr.bf16.gmra.mrb[20].mxu1 %v2838_v41  ;;  %v382_v40 = vld [vmem:[#allocation2 + $0x118] sm:$0xff] }
  0xad   : > { %1003 = vmatprep.mubr.bf16.mxu0 %v2839_v42  ;;  %1131 = vmatprep.mubr.bf16.mxu1 %v2841_v43 }
  0xb4   : > { %1004 = vmatmul.mubr.bf16.gmra.mrb[24].mxu0 %v2843_v44  ;;  %1132 = vmatmul.mubr.bf16.gmra.mrb[24].mxu1 %v2844_v45 }
  0xb5   : > { %1011 = vmatprep.mubr.bf16.mxu0 %v2845_v46  ;;  %1139 = vmatprep.mubr.bf16.mxu1 %v2847_v47 }
  0xbc   : > { %1012 = vmatmul.mubr.bf16.gmra.mrb[28].mxu0 %v2849_v48  ;;  %1140 = vmatmul.mubr.bf16.gmra.mrb[28].mxu1 %v2850_v49 }
  0xbd   : > { %1019 = vmatprep.mubr.bf16.mxu0 %v2851_v50  ;;  %1147 = vmatprep.mubr.bf16.mxu1 %v2853_v51 }
  0xc4   : > { %1020 = vmatmul.mubr.bf16.gmra.mrb[32].mxu0 %v2855_v52  ;;  %1148 = vmatmul.mubr.bf16.gmra.mrb[32].mxu1 %v2856_v53 }
  0xc5   : > { %1027 = vmatprep.mubr.bf16.mxu0 %v2857_v54  ;;  %1155 = vmatprep.mubr.bf16.mxu1 %v2859_v55 }
  0xcc   : > { %1028 = vmatmul.mubr.bf16.gmra.mrb[36].mxu0 %v2861_v56  ;;  %1156 = vmatmul.mubr.bf16.gmra.mrb[36].mxu1 %v2862_v57 }
  0xcd   : > { %1035 = vmatprep.mubr.bf16.mxu0 %v2863_v58  ;;  %1163 = vmatprep.mubr.bf16.mxu1 %v2865_v59 }
  0xd4   : > { %1036 = vmatmul.mubr.bf16.gmra.mrb[40].mxu0 %v2867_v60  ;;  %1164 = vmatmul.mubr.bf16.gmra.mrb[40].mxu1 %v2868_v61  ;;  %v351_v61 = vld [vmem:[#allocation2 + $0x20] sm:$0xff] }
  0xd5   : > { %1043 = vmatprep.mubr.bf16.mxu0 %v2869_v62  ;;  %1171 = vmatprep.mubr.bf16.mxu1 %v2871_v63  ;;  %v383_v62 = vld [vmem:[#allocation2 + $0x120] sm:$0xff] }
  0xdc   : > { %1044 = vmatmul.mubr.bf16.gmra.mrb[44].mxu0 %v2873_v0  ;;  %1172 = vmatmul.mubr.bf16.gmra.mrb[44].mxu1 %v2874_v1 }
  0xdd   : > { %1051 = vmatprep.mubr.bf16.mxu0 %v2875_v2  ;;  %1179 = vmatprep.mubr.bf16.mxu1 %v2877_v3 }
  0xe4   : > { %1052 = vmatmul.mubr.bf16.gmra.mrb[48].mxu0 %v2879_v4  ;;  %1180 = vmatmul.mubr.bf16.gmra.mrb[48].mxu1 %v2880_v5  ;;  %v352_v5 = vld [vmem:[#allocation2 + $0x28] sm:$0xff] }
  0xe5   : > { %1059 = vmatprep.mubr.bf16.mxu0 %v2881_v6  ;;  %1187 = vmatprep.mubr.bf16.mxu1 %v2883_v7  ;;  %v384_v6 = vld [vmem:[#allocation2 + $0x128] sm:$0xff] }
  0xec   : > { %1060 = vmatmul.mubr.bf16.gmra.mrb[52].mxu0 %v2885_v8  ;;  %1188 = vmatmul.mubr.bf16.gmra.mrb[52].mxu1 %v2886_v9 }
  0xed   : > { %1067 = vmatprep.mubr.bf16.mxu0 %v2887_v10  ;;  %1195 = vmatprep.mubr.bf16.mxu1 %v2889_v11 }
  0xf4   : > { %1068 = vmatmul.mubr.bf16.gmra.mrb[56].mxu0 %v2891_v12  ;;  %1196 = vmatmul.mubr.bf16.gmra.mrb[56].mxu1 %v2892_v13 }
  0xf5   : > { %1075 = vmatprep.mubr.bf16.mxu0 %v2893_v14  ;;  %1203 = vmatprep.mubr.bf16.mxu1 %v2895_v15 }
  0xfc   : > { %1076 = vmatmul.mubr.bf16.gmra.mrb[60].mxu0 %v2897_v16  ;;  %1204 = vmatmul.mubr.bf16.gmra.mrb[60].mxu1 %v2898_v17 }
 0x157   : > { %v957_v20 = vpop.f32.mrb[0].mxu0  ;;  %v1085_v21 = vpop.f32.mrb[0].mxu1 }
 0x158   : > { %v1212_v24 = vadd.f32 %v957_v20, %v347_v18  ;;  %v1244_v25 = vadd.f32 %v1085_v21, %v379_v19  ;;  %v959_v26 = vpop.f32.mrb[1].mxu0  ;;  %v1087_v27 = vpop.f32.mrb[1].mxu1 }
 0x159   : > { %v960_v28 = vpop.f32.mrb[2].mxu0  ;;  %v1088_v29 = vpop.f32.mrb[2].mxu1 }
 0x15a   : > { %1277 = vst.msk [vmem:[#allocation2] sm:$0xff] %vm282_vm0, %v1212_v24  ;;  %1309 = vst.msk [vmem:[#allocation2 + $0x100] sm:$0xff] %vm282_vm0, %v1244_v25  ;;  %v1213_v30 = vadd.f32 %v960_v28, %v348_v22  ;;  %v1245_v31 = vadd.f32 %v1088_v29, %v380_v23  ;;  %v962_v32 = vpop.f32.mrb[3].mxu0  ;;  %v1090_v33 = vpop.f32.mrb[3].mxu1  ;;  %v353_v29 = vld [vmem:[#allocation2 + $0x30] sm:$0xff] }
 0x15c   : > { %1278 = vst.msk [vmem:[#allocation2 + $0x8] sm:$0xff] %vm282_vm0, %v1213_v30  ;;  %1310 = vst.msk [vmem:[#allocation2 + $0x108] sm:$0xff] %vm282_vm0, %v1245_v31  ;;  %v385_v30 = vld [vmem:[#allocation2 + $0x130] sm:$0xff] }
 0x15f   : > { %v965_v37 = vpop.f32.mrb[4].mxu0  ;;  %v1093_v38 = vpop.f32.mrb[4].mxu1 }
 0x160   : > { %v1214_v41 = vadd.f32 %v965_v37, %v349_v34  ;;  %v1246_v42 = vadd.f32 %v1093_v38, %v381_v35  ;;  %v967_v43 = vpop.f32.mrb[5].mxu0  ;;  %v1095_v44 = vpop.f32.mrb[5].mxu1  ;;  %v354_v38 = vld [vmem:[#allocation2 + $0x38] sm:$0xff] }
 0x161   : > { %v1344_v45 = vld [vmem:[#allocation2] sm:$0xff]  ;;  %v968_v47 = vpop.f32.mrb[6].mxu0  ;;  %v1096_v48 = vpop.f32.mrb[6].mxu1 }
 0x162   : > { %v1376_v46 = vld [vmem:[#allocation2 + $0x100] sm:$0xff]  ;;  %v1415_v49 = vadd.f32 %v3458_v36, %v1344_v45  ;;  %1279 = vst.msk [vmem:[#allocation2 + $0x10] sm:$0xff] %vm282_vm0, %v1214_v41  ;;  %1311 = vst.msk [vmem:[#allocation2 + $0x110] sm:$0xff] %vm282_vm0, %v1246_v42  ;;  %v1215_v51 = vadd.f32 %v968_v47, %v350_v39  ;;  %v1247_v52 = vadd.f32 %v1096_v48, %v382_v40  ;;  %v970_v53 = vpop.f32.mrb[7].mxu0  ;;  %v1098_v54 = vpop.f32.mrb[7].mxu1  ;;  %v386_v39 = vld [vmem:[#allocation2 + $0x138] sm:$0xff] }
 0x163   : > { %v1447_v50 = vadd.f32 %v3458_v36, %v1376_v46  ;;  %v1345_v55 = vld [vmem:[#allocation2 + $0x8] sm:$0xff] }
 0x164   : > { %v1377_v56 = vld [vmem:[#allocation2 + $0x108] sm:$0xff]  ;;  %v1479_v57 = vmax.f32 %v1415_v49, 0.0  ;;  %v1416_v59 = vadd.f32 %v3458_v36, %v1345_v55  ;;  %1280 = vst.msk [vmem:[#allocation2 + $0x18] sm:$0xff] %vm282_vm0, %v1215_v51  ;;  %1312 = vst.msk [vmem:[#allocation2 + $0x118] sm:$0xff] %vm282_vm0, %v1247_v52 }
 0x165   : > { %v1511_v58 = vmax.f32 %v1447_v50, 0.0  ;;  %v1448_v60 = vadd.f32 %v3458_v36, %v1377_v56 }
 0x166   : > { %v2571_v63 = vpack.c.bf16 %v1479_v57, %v1479_v57  ;;  %v1480_v1 = vmax.f32 %v1416_v59, 0.0 }
 0x167   : > { %v2603_v0 = vpack.c.bf16 %v1511_v58, %v1511_v58  ;;  %v1512_v2 = vmax.f32 %v1448_v60, 0.0  ;;  %v973_v3 = vpop.f32.mrb[8].mxu0  ;;  %v1101_v4 = vpop.f32.mrb[8].mxu1 }
 0x168   : > { %1800 = vst.msk [vmem:[%s3469_s7] sm:$0xf] %vm1799_vm1, %v2571_v63  ;;  %v2572_v7 = vpack.c.bf16 %v1480_v1, %v1480_v1  ;;  %v1216_v9 = vadd.f32 %v973_v3, %v351_v61  ;;  %v1248_v10 = vadd.f32 %v1101_v4, %v383_v62  ;;  %v975_v11 = vpop.f32.mrb[9].mxu0  ;;  %v1103_v12 = vpop.f32.mrb[9].mxu1  ;;  %v355_v62 = vld [vmem:[#allocation2 + $0x40] sm:$0xff] }
 0x169   : > { %1832 = vst.msk [vmem:[%s3469_s7 + $0x80] sm:$0xf] %vm1799_vm1, %v2603_v0  ;;  %v2604_v8 = vpack.c.bf16 %v1512_v2, %v1512_v2  ;;  %v1346_v13 = vld [vmem:[#allocation2 + $0x10] sm:$0xff]  ;;  %v976_v15 = vpop.f32.mrb[10].mxu0  ;;  %v1104_v16 = vpop.f32.mrb[10].mxu1  ;;  %v387_v63 = vld [vmem:[#allocation2 + $0x140] sm:$0xff] }
 0x16a   : > { %v1378_v14 = vld [vmem:[#allocation2 + $0x110] sm:$0xff]  ;;  %1801 = vst.msk [vmem:[%s3469_s7 + $0x4] sm:$0xf] %vm1799_vm1, %v2572_v7  ;;  %v1417_v17 = vadd.f32 %v3458_v36, %v1346_v13  ;;  %v1217_v19 = vadd.f32 %v976_v15, %v352_v5  ;;  %v1249_v20 = vadd.f32 %v1104_v16, %v384_v6  ;;  %v978_v21 = vpop.f32.mrb[11].mxu0  ;;  %v1106_v22 = vpop.f32.mrb[11].mxu1  ;;  %v356_v6 = vld [vmem:[#allocation2 + $0x48] sm:$0xff] }
 0x16b   : > { %1833 = vst.msk [vmem:[%s3469_s7 + $0x84] sm:$0xf] %vm1799_vm1, %v2604_v8  ;;  %v1449_v18 = vadd.f32 %v3458_v36, %v1378_v14  ;;  %v1347_v23 = vld [vmem:[#allocation2 + $0x18] sm:$0xff]  ;;  %v388_v7 = vld [vmem:[#allocation2 + $0x148] sm:$0xff] }
 0x16c   : > { %1281 = vst.msk [vmem:[#allocation2 + $0x20] sm:$0xff] %vm282_vm0, %v1216_v9  ;;  %1313 = vst.msk [vmem:[#allocation2 + $0x120] sm:$0xff] %vm282_vm0, %v1248_v10  ;;  %v1379_v24 = vld [vmem:[#allocation2 + $0x118] sm:$0xff]  ;;  %v1481_v25 = vmax.f32 %v1417_v17, 0.0  ;;  %v1418_v27 = vadd.f32 %v3458_v36, %v1347_v23 }
 0x16d   : > { %v1513_v26 = vmax.f32 %v1449_v18, 0.0  ;;  %v1450_v28 = vadd.f32 %v3458_v36, %v1379_v24  ;;  %1282 = vst.msk [vmem:[#allocation2 + $0x28] sm:$0xff] %vm282_vm0, %v1217_v19  ;;  %1314 = vst.msk [vmem:[#allocation2 + $0x128] sm:$0xff] %vm282_vm0, %v1249_v20 }
 0x16e   : > { %v2573_v31 = vpack.c.bf16 %v1481_v25, %v1481_v25  ;;  %v1482_v33 = vmax.f32 %v1418_v27, 0.0 }
 0x16f   : > { %v2605_v32 = vpack.c.bf16 %v1513_v26, %v1513_v26  ;;  %v1514_v34 = vmax.f32 %v1450_v28, 0.0  ;;  %v981_v35 = vpop.f32.mrb[12].mxu0  ;;  %v1109_v37 = vpop.f32.mrb[12].mxu1 }
 0x170   : > { %1802 = vst.msk [vmem:[%s3469_s7 + $0x8] sm:$0xf] %vm1799_vm1, %v2573_v31  ;;  %v2574_v40 = vpack.c.bf16 %v1482_v33, %v1482_v33  ;;  %v1218_v42 = vadd.f32 %v981_v35, %v353_v29  ;;  %v1250_v43 = vadd.f32 %v1109_v37, %v385_v30  ;;  %v983_v44 = vpop.f32.mrb[13].mxu0  ;;  %v1111_v45 = vpop.f32.mrb[13].mxu1  ;;  %v357_v30 = vld [vmem:[#allocation2 + $0x50] sm:$0xff] }
 0x171   : > { %1834 = vst.msk [vmem:[%s3469_s7 + $0x88] sm:$0xf] %vm1799_vm1, %v2605_v32  ;;  %v2606_v41 = vpack.c.bf16 %v1514_v34, %v1514_v34  ;;  %v984_v48 = vpop.f32.mrb[14].mxu0  ;;  %v1112_v49 = vpop.f32.mrb[14].mxu1  ;;  %v389_v31 = vld [vmem:[#allocation2 + $0x150] sm:$0xff] }
 0x172   : > { %1803 = vst.msk [vmem:[%s3469_s7 + $0xc] sm:$0xf] %vm1799_vm1, %v2574_v40  ;;  %v1219_v52 = vadd.f32 %v984_v48, %v354_v38  ;;  %v1251_v53 = vadd.f32 %v1112_v49, %v386_v39  ;;  %v986_v54 = vpop.f32.mrb[15].mxu0  ;;  %v1114_v55 = vpop.f32.mrb[15].mxu1  ;;  %v358_v39 = vld [vmem:[#allocation2 + $0x58] sm:$0xff] }
 0x173   : > { %v1348_v46 = vld [vmem:[#allocation2 + $0x20] sm:$0xff]  ;;  %1835 = vst.msk [vmem:[%s3469_s7 + $0x8c] sm:$0xf] %vm1799_vm1, %v2606_v41  ;;  %v390_v40 = vld [vmem:[#allocation2 + $0x158] sm:$0xff] }
 0x174   : > { %v1380_v47 = vld [vmem:[#allocation2 + $0x120] sm:$0xff]  ;;  %v1419_v50 = vadd.f32 %v3458_v36, %v1348_v46  ;;  %1283 = vst.msk [vmem:[#allocation2 + $0x30] sm:$0xff] %vm282_vm0, %v1218_v42  ;;  %1315 = vst.msk [vmem:[#allocation2 + $0x130] sm:$0xff] %vm282_vm0, %v1250_v43  ;;  %v1349_v56 = vld [vmem:[#allocation2 + $0x28] sm:$0xff] }
 0x175   : > { %v1451_v51 = vadd.f32 %v3458_v36, %v1380_v47  ;;  %v1381_v57 = vld [vmem:[#allocation2 + $0x128] sm:$0xff]  ;;  %v1420_v60 = vadd.f32 %v3458_v36, %v1349_v56  ;;  %1284 = vst.msk [vmem:[#allocation2 + $0x38] sm:$0xff] %vm282_vm0, %v1219_v52  ;;  %1316 = vst.msk [vmem:[#allocation2 + $0x138] sm:$0xff] %vm282_vm0, %v1251_v53 }
 0x176   : > { %v1483_v58 = vmax.f32 %v1419_v50, 0.0  ;;  %v1452_v61 = vadd.f32 %v3458_v36, %v1381_v57 }
 0x177   : > { %v1515_v59 = vmax.f32 %v1451_v51, 0.0  ;;  %v1484_v2 = vmax.f32 %v1420_v60, 0.0  ;;  %v989_v4 = vpop.f32.mrb[16].mxu0  ;;  %v1117_v5 = vpop.f32.mrb[16].mxu1 }
 0x178   : > { %v2575_v0 = vpack.c.bf16 %v1483_v58, %v1483_v58  ;;  %v1516_v3 = vmax.f32 %v1452_v61, 0.0  ;;  %v1220_v10 = vadd.f32 %v989_v4, %v355_v62  ;;  %v1252_v11 = vadd.f32 %v1117_v5, %v387_v63  ;;  %v991_v12 = vpop.f32.mrb[17].mxu0  ;;  %v1119_v13 = vpop.f32.mrb[17].mxu1  ;;  %v359_v63 = vld [vmem:[#allocation2 + $0x60] sm:$0xff] }
 0x179   : > { %v2607_v1 = vpack.c.bf16 %v1515_v59, %v1515_v59  ;;  %v2576_v8 = vpack.c.bf16 %v1484_v2, %v1484_v2  ;;  %v992_v16 = vpop.f32.mrb[18].mxu0  ;;  %v1120_v17 = vpop.f32.mrb[18].mxu1 }
 0x17a   : > { %1804 = vst.msk [vmem:[%s3469_s7 + $0x10] sm:$0xf] %vm1799_vm1, %v2575_v0  ;;  %v2608_v9 = vpack.c.bf16 %v1516_v3, %v1516_v3  ;;  %v1221_v20 = vadd.f32 %v992_v16, %v356_v6  ;;  %v1253_v21 = vadd.f32 %v1120_v17, %v388_v7  ;;  %v994_v22 = vpop.f32.mrb[19].mxu0  ;;  %v1122_v23 = vpop.f32.mrb[19].mxu1  ;;  %v391_v0 = vld [vmem:[#allocation2 + $0x160] sm:$0xff]  ;;  %v360_v7 = vld [vmem:[#allocation2 + $0x68] sm:$0xff] }
 0x17b   : > { %1836 = vst.msk [vmem:[%s3469_s7 + $0x90] sm:$0xf] %vm1799_vm1, %v2607_v1  ;;  %v1350_v14 = vld [vmem:[#allocation2 + $0x30] sm:$0xff]  ;;  %1805 = vst.msk [vmem:[%s3469_s7 + $0x14] sm:$0xf] %vm1799_vm1, %v2576_v8  ;;  %v392_v8 = vld [vmem:[#allocation2 + $0x168] sm:$0xff] }
 0x17c   : > { %v1382_v15 = vld [vmem:[#allocation2 + $0x130] sm:$0xff]  ;;  %1837 = vst.msk [vmem:[%s3469_s7 + $0x94] sm:$0xf] %vm1799_vm1, %v2608_v9  ;;  %v1421_v18 = vadd.f32 %v3458_v36, %v1350_v14  ;;  %v1351_v24 = vld [vmem:[#allocation2 + $0x38] sm:$0xff] }
 0x17d   : > { %v1453_v19 = vadd.f32 %v3458_v36, %v1382_v15  ;;  %1285 = vst.msk [vmem:[#allocation2 + $0x40] sm:$0xff] %vm282_vm0, %v1220_v10  ;;  %1317 = vst.msk [vmem:[#allocation2 + $0x140] sm:$0xff] %vm282_vm0, %v1252_v11  ;;  %v1383_v25 = vld [vmem:[#allocation2 + $0x138] sm:$0xff]  ;;  %v1422_v28 = vadd.f32 %v3458_v36, %v1351_v24 }
 0x17e   : > { %v1485_v26 = vmax.f32 %v1421_v18, 0.0  ;;  %v1454_v29 = vadd.f32 %v3458_v36, %v1383_v25  ;;  %1286 = vst.msk [vmem:[#allocation2 + $0x48] sm:$0xff] %vm282_vm0, %v1221_v20  ;;  %1318 = vst.msk [vmem:[#allocation2 + $0x148] sm:$0xff] %vm282_vm0, %v1253_v21 }
 0x17f   : > { %v1517_v27 = vmax.f32 %v1453_v19, 0.0  ;;  %v1486_v34 = vmax.f32 %v1422_v28, 0.0  ;;  %v997_v37 = vpop.f32.mrb[20].mxu0  ;;  %v1125_v38 = vpop.f32.mrb[20].mxu1 }
 0x180   : > { %v2577_v32 = vpack.c.bf16 %v1485_v26, %v1485_v26  ;;  %v1518_v35 = vmax.f32 %v1454_v29, 0.0  ;;  %v1222_v43 = vadd.f32 %v997_v37, %v357_v30  ;;  %v1254_v44 = vadd.f32 %v1125_v38, %v389_v31  ;;  %v999_v45 = vpop.f32.mrb[21].mxu0  ;;  %v1127_v46 = vpop.f32.mrb[21].mxu1  ;;  %v361_v31 = vld [vmem:[#allocation2 + $0x70] sm:$0xff] }
 0x181   : > { %v2609_v33 = vpack.c.bf16 %v1517_v27, %v1517_v27  ;;  %v2578_v41 = vpack.c.bf16 %v1486_v34, %v1486_v34  ;;  %v1000_v49 = vpop.f32.mrb[22].mxu0  ;;  %v1128_v50 = vpop.f32.mrb[22].mxu1 }
 0x182   : > { %1806 = vst.msk [vmem:[%s3469_s7 + $0x18] sm:$0xf] %vm1799_vm1, %v2577_v32  ;;  %v2610_v42 = vpack.c.bf16 %v1518_v35, %v1518_v35  ;;  %v1223_v53 = vadd.f32 %v1000_v49, %v358_v39  ;;  %v1255_v54 = vadd.f32 %v1128_v50, %v390_v40  ;;  %v1002_v55 = vpop.f32.mrb[23].mxu0  ;;  %v1130_v56 = vpop.f32.mrb[23].mxu1  ;;  %v393_v32 = vld [vmem:[#allocation2 + $0x170] sm:$0xff]  ;;  %v362_v40 = vld [vmem:[#allocation2 + $0x78] sm:$0xff] }
 0x183   : > { %1838 = vst.msk [vmem:[%s3469_s7 + $0x98] sm:$0xf] %vm1799_vm1, %v2609_v33  ;;  %1807 = vst.msk [vmem:[%s3469_s7 + $0x1c] sm:$0xf] %vm1799_vm1, %v2578_v41  ;;  %v394_v41 = vld [vmem:[#allocation2 + $0x178] sm:$0xff] }
 0x184   : > { %v1352_v47 = vld [vmem:[#allocation2 + $0x40] sm:$0xff]  ;;  %1839 = vst.msk [vmem:[%s3469_s7 + $0x9c] sm:$0xf] %vm1799_vm1, %v2610_v42 }
 0x185   : > { %v1384_v48 = vld [vmem:[#allocation2 + $0x140] sm:$0xff]  ;;  %v1423_v51 = vadd.f32 %v3458_v36, %v1352_v47  ;;  %1287 = vst.msk [vmem:[#allocation2 + $0x50] sm:$0xff] %vm282_vm0, %v1222_v43  ;;  %1319 = vst.msk [vmem:[#allocation2 + $0x150] sm:$0xff] %vm282_vm0, %v1254_v44  ;;  %v1353_v57 = vld [vmem:[#allocation2 + $0x48] sm:$0xff] }
 0x186   : > { %v1455_v52 = vadd.f32 %v3458_v36, %v1384_v48  ;;  %v1385_v58 = vld [vmem:[#allocation2 + $0x148] sm:$0xff]  ;;  %v1424_v61 = vadd.f32 %v3458_v36, %v1353_v57  ;;  %1288 = vst.msk [vmem:[#allocation2 + $0x58] sm:$0xff] %vm282_vm0, %v1223_v53  ;;  %1320 = vst.msk [vmem:[#allocation2 + $0x158] sm:$0xff] %vm282_vm0, %v1255_v54 }
 0x187   : > { %v1487_v59 = vmax.f32 %v1423_v51, 0.0  ;;  %v1456_v62 = vadd.f32 %v3458_v36, %v1385_v58  ;;  %v1005_v5 = vpop.f32.mrb[24].mxu0  ;;  %v1133_v6 = vpop.f32.mrb[24].mxu1 }
 0x188   : > { %v1519_v60 = vmax.f32 %v1455_v52, 0.0  ;;  %v1488_v3 = vmax.f32 %v1424_v61, 0.0  ;;  %v1224_v11 = vadd.f32 %v1005_v5, %v359_v63  ;;  %v1256_v12 = vadd.f32 %v1133_v6, %v391_v0  ;;  %v1007_v13 = vpop.f32.mrb[25].mxu0  ;;  %v1135_v14 = vpop.f32.mrb[25].mxu1  ;;  %v363_v0 = vld [vmem:[#allocation2 + $0x80] sm:$0xff] }
 0x189   : > { %v2579_v1 = vpack.c.bf16 %v1487_v59, %v1487_v59  ;;  %v1520_v4 = vmax.f32 %v1456_v62, 0.0  ;;  %v1008_v17 = vpop.f32.mrb[26].mxu0  ;;  %v1136_v18 = vpop.f32.mrb[26].mxu1 }
 0x18a   : > { %v2611_v2 = vpack.c.bf16 %v1519_v60, %v1519_v60  ;;  %v2580_v9 = vpack.c.bf16 %v1488_v3, %v1488_v3  ;;  %1289 = vst.msk [vmem:[#allocation2 + $0x60] sm:$0xff] %vm282_vm0, %v1224_v11  ;;  %1321 = vst.msk [vmem:[#allocation2 + $0x160] sm:$0xff] %vm282_vm0, %v1256_v12  ;;  %v1225_v21 = vadd.f32 %v1008_v17, %v360_v7  ;;  %v1010_v23 = vpop.f32.mrb[27].mxu0  ;;  %v1138_v24 = vpop.f32.mrb[27].mxu1 }
 0x18b   : > { %1808 = vst.msk [vmem:[%s3469_s7 + $0x20] sm:$0xf] %vm1799_vm1, %v2579_v1  ;;  %v2612_v10 = vpack.c.bf16 %v1520_v4, %v1520_v4  ;;  %v1257_v22 = vadd.f32 %v1136_v18, %v392_v8  ;;  %v395_v1 = vld [vmem:[#allocation2 + $0x180] sm:$0xff]  ;;  %v364_v8 = vld [vmem:[#allocation2 + $0x88] sm:$0xff] }
 0x18c   : > { %1840 = vst.msk [vmem:[%s3469_s7 + $0xa0] sm:$0xf] %vm1799_vm1, %v2611_v2  ;;  %v1354_v15 = vld [vmem:[#allocation2 + $0x50] sm:$0xff]  ;;  %1809 = vst.msk [vmem:[%s3469_s7 + $0x24] sm:$0xf] %vm1799_vm1, %v2580_v9  ;;  %v396_v9 = vld [vmem:[#allocation2 + $0x188] sm:$0xff] }
 0x18d   : > { %v1386_v16 = vld [vmem:[#allocation2 + $0x150] sm:$0xff]  ;;  %1841 = vst.msk [vmem:[%s3469_s7 + $0xa4] sm:$0xf] %vm1799_vm1, %v2612_v10  ;;  %v1425_v19 = vadd.f32 %v3458_v36, %v1354_v15  ;;  %v1355_v25 = vld [vmem:[#allocation2 + $0x58] sm:$0xff] }
 0x18e   : > { %v1457_v20 = vadd.f32 %v3458_v36, %v1386_v16  ;;  %v1387_v26 = vld [vmem:[#allocation2 + $0x158] sm:$0xff]  ;;  %v1426_v29 = vadd.f32 %v3458_v36, %v1355_v25  ;;  %1290 = vst.msk [vmem:[#allocation2 + $0x68] sm:$0xff] %vm282_vm0, %v1225_v21  ;;  %1322 = vst.msk [vmem:[#allocation2 + $0x168] sm:$0xff] %vm282_vm0, %v1257_v22 }
 0x18f   : > { %v1489_v27 = vmax.f32 %v1425_v19, 0.0  ;;  %v1458_v30 = vadd.f32 %v3458_v36, %v1387_v26  ;;  %v1013_v38 = vpop.f32.mrb[28].mxu0  ;;  %v1141_v39 = vpop.f32.mrb[28].mxu1 }
 0x190   : > { %v1521_v28 = vmax.f32 %v1457_v20, 0.0  ;;  %v1490_v35 = vmax.f32 %v1426_v29, 0.0  ;;  %v1226_v44 = vadd.f32 %v1013_v38, %v361_v31  ;;  %v1258_v45 = vadd.f32 %v1141_v39, %v393_v32  ;;  %v1015_v46 = vpop.f32.mrb[29].mxu0  ;;  %v1143_v47 = vpop.f32.mrb[29].mxu1  ;;  %v365_v32 = vld [vmem:[#allocation2 + $0x90] sm:$0xff] }
 0x191   : > { %v2581_v33 = vpack.c.bf16 %v1489_v27, %v1489_v27  ;;  %v1522_v37 = vmax.f32 %v1458_v30, 0.0  ;;  %v1356_v48 = vld [vmem:[#allocation2 + $0x60] sm:$0xff]  ;;  %v1016_v50 = vpop.f32.mrb[30].mxu0  ;;  %v1144_v51 = vpop.f32.mrb[30].mxu1 }
 0x192   : > { %v2613_v34 = vpack.c.bf16 %v1521_v28, %v1521_v28  ;;  %v2582_v42 = vpack.c.bf16 %v1490_v35, %v1490_v35  ;;  %v1388_v49 = vld [vmem:[#allocation2 + $0x160] sm:$0xff]  ;;  %v1427_v52 = vadd.f32 %v3458_v36, %v1356_v48  ;;  %1291 = vst.msk [vmem:[#allocation2 + $0x70] sm:$0xff] %vm282_vm0, %v1226_v44  ;;  %1323 = vst.msk [vmem:[#allocation2 + $0x170] sm:$0xff] %vm282_vm0, %v1258_v45  ;;  %v1018_v56 = vpop.f32.mrb[31].mxu0  ;;  %v1146_v57 = vpop.f32.mrb[31].mxu1 }
 0x193   : > { %1810 = vst.msk [vmem:[%s3469_s7 + $0x28] sm:$0xf] %vm1799_vm1, %v2581_v33  ;;  %v2614_v43 = vpack.c.bf16 %v1522_v37, %v1522_v37  ;;  %v1459_v53 = vadd.f32 %v3458_v36, %v1388_v49  ;;  %v1227_v54 = vadd.f32 %v1016_v50, %v362_v40  ;;  %v1259_v55 = vadd.f32 %v1144_v51, %v394_v41  ;;  %v397_v33 = vld [vmem:[#allocation2 + $0x190] sm:$0xff]  ;;  %v366_v41 = vld [vmem:[#allocation2 + $0x98] sm:$0xff] }
 0x194   : > { %1842 = vst.msk [vmem:[%s3469_s7 + $0xa8] sm:$0xf] %vm1799_vm1, %v2613_v34  ;;  %1811 = vst.msk [vmem:[%s3469_s7 + $0x2c] sm:$0xf] %vm1799_vm1, %v2582_v42  ;;  %v1491_v60 = vmax.f32 %v1427_v52, 0.0  ;;  %v398_v42 = vld [vmem:[#allocation2 + $0x198] sm:$0xff] }
 0x195   : > { %1843 = vst.msk [vmem:[%s3469_s7 + $0xac] sm:$0xf] %vm1799_vm1, %v2614_v43  ;;  %v1357_v58 = vld [vmem:[#allocation2 + $0x68] sm:$0xff]  ;;  %v1523_v61 = vmax.f32 %v1459_v53, 0.0 }
 0x196   : > { %v1389_v59 = vld [vmem:[#allocation2 + $0x168] sm:$0xff]  ;;  %v1428_v62 = vadd.f32 %v3458_v36, %v1357_v58  ;;  %1292 = vst.msk [vmem:[#allocation2 + $0x78] sm:$0xff] %vm282_vm0, %v1227_v54  ;;  %1324 = vst.msk [vmem:[#allocation2 + $0x178] sm:$0xff] %vm282_vm0, %v1259_v55  ;;  %v2583_v2 = vpack.c.bf16 %v1491_v60, %v1491_v60 }
 0x197   : > { %v1460_v63 = vadd.f32 %v3458_v36, %v1389_v59  ;;  %v2615_v3 = vpack.c.bf16 %v1523_v61, %v1523_v61  ;;  %v1021_v6 = vpop.f32.mrb[32].mxu0  ;;  %v1149_v7 = vpop.f32.mrb[32].mxu1 }
 0x198   : > { %v1492_v4 = vmax.f32 %v1428_v62, 0.0  ;;  %1812 = vst.msk [vmem:[%s3469_s7 + $0x30] sm:$0xf] %vm1799_vm1, %v2583_v2  ;;  %v1228_v12 = vadd.f32 %v1021_v6, %v363_v0  ;;  %v1260_v13 = vadd.f32 %v1149_v7, %v395_v1  ;;  %v1023_v14 = vpop.f32.mrb[33].mxu0  ;;  %v1151_v15 = vpop.f32.mrb[33].mxu1  ;;  %v367_v1 = vld [vmem:[#allocation2 + $0xa0] sm:$0xff] }
 0x199   : > { %v1524_v5 = vmax.f32 %v1460_v63, 0.0  ;;  %1844 = vst.msk [vmem:[%s3469_s7 + $0xb0] sm:$0xf] %vm1799_vm1, %v2615_v3  ;;  %v1358_v16 = vld [vmem:[#allocation2 + $0x70] sm:$0xff]  ;;  %v1024_v18 = vpop.f32.mrb[34].mxu0  ;;  %v1152_v19 = vpop.f32.mrb[34].mxu1 }
 0x19a   : > { %v2584_v10 = vpack.c.bf16 %v1492_v4, %v1492_v4  ;;  %v1390_v17 = vld [vmem:[#allocation2 + $0x170] sm:$0xff]  ;;  %v1429_v20 = vadd.f32 %v3458_v36, %v1358_v16  ;;  %1293 = vst.msk [vmem:[#allocation2 + $0x80] sm:$0xff] %vm282_vm0, %v1228_v12  ;;  %1325 = vst.msk [vmem:[#allocation2 + $0x180] sm:$0xff] %vm282_vm0, %v1260_v13  ;;  %v1229_v22 = vadd.f32 %v1024_v18, %v364_v8  ;;  %v1026_v24 = vpop.f32.mrb[35].mxu0  ;;  %v1154_v25 = vpop.f32.mrb[35].mxu1  ;;  %v399_v2 = vld [vmem:[#allocation2 + $0x1a0] sm:$0xff] }
 0x19b   : > { %v2616_v11 = vpack.c.bf16 %v1524_v5, %v1524_v5  ;;  %v1461_v21 = vadd.f32 %v3458_v36, %v1390_v17  ;;  %v1261_v23 = vadd.f32 %v1152_v19, %v396_v9  ;;  %v368_v9 = vld [vmem:[#allocation2 + $0xa8] sm:$0xff] }
 0x19c   : > { %1813 = vst.msk [vmem:[%s3469_s7 + $0x34] sm:$0xf] %vm1799_vm1, %v2584_v10  ;;  %v1493_v28 = vmax.f32 %v1429_v20, 0.0  ;;  %v400_v10 = vld [vmem:[#allocation2 + $0x1a8] sm:$0xff] }
 0x19d   : > { %1845 = vst.msk [vmem:[%s3469_s7 + $0xb4] sm:$0xf] %vm1799_vm1, %v2616_v11  ;;  %v1359_v26 = vld [vmem:[#allocation2 + $0x78] sm:$0xff]  ;;  %v1525_v29 = vmax.f32 %v1461_v21, 0.0 }
 0x19e   : > { %v1391_v27 = vld [vmem:[#allocation2 + $0x178] sm:$0xff]  ;;  %v1430_v30 = vadd.f32 %v3458_v36, %v1359_v26  ;;  %1294 = vst.msk [vmem:[#allocation2 + $0x88] sm:$0xff] %vm282_vm0, %v1229_v22  ;;  %1326 = vst.msk [vmem:[#allocation2 + $0x188] sm:$0xff] %vm282_vm0, %v1261_v23  ;;  %v2585_v34 = vpack.c.bf16 %v1493_v28, %v1493_v28 }
 0x19f   : > { %v1462_v31 = vadd.f32 %v3458_v36, %v1391_v27  ;;  %v2617_v35 = vpack.c.bf16 %v1525_v29, %v1525_v29  ;;  %v1029_v39 = vpop.f32.mrb[36].mxu0  ;;  %v1157_v40 = vpop.f32.mrb[36].mxu1 }
 0x1a0   : > { %v1494_v37 = vmax.f32 %v1430_v30, 0.0  ;;  %1814 = vst.msk [vmem:[%s3469_s7 + $0x38] sm:$0xf] %vm1799_vm1, %v2585_v34  ;;  %v1230_v45 = vadd.f32 %v1029_v39, %v365_v32  ;;  %v1262_v46 = vadd.f32 %v1157_v40, %v397_v33  ;;  %v1031_v47 = vpop.f32.mrb[37].mxu0  ;;  %v1159_v48 = vpop.f32.mrb[37].mxu1  ;;  %v369_v33 = vld [vmem:[#allocation2 + $0xb0] sm:$0xff] }
 0x1a1   : > { %v1526_v38 = vmax.f32 %v1462_v31, 0.0  ;;  %1846 = vst.msk [vmem:[%s3469_s7 + $0xb8] sm:$0xf] %vm1799_vm1, %v2617_v35  ;;  %v1360_v49 = vld [vmem:[#allocation2 + $0x80] sm:$0xff]  ;;  %v1032_v51 = vpop.f32.mrb[38].mxu0  ;;  %v1160_v52 = vpop.f32.mrb[38].mxu1 }
 0x1a2   : > { %v2586_v43 = vpack.c.bf16 %v1494_v37, %v1494_v37  ;;  %v1392_v50 = vld [vmem:[#allocation2 + $0x180] sm:$0xff]  ;;  %v1431_v53 = vadd.f32 %v3458_v36, %v1360_v49  ;;  %1295 = vst.msk [vmem:[#allocation2 + $0x90] sm:$0xff] %vm282_vm0, %v1230_v45  ;;  %1327 = vst.msk [vmem:[#allocation2 + $0x190] sm:$0xff] %vm282_vm0, %v1262_v46  ;;  %v1231_v55 = vadd.f32 %v1032_v51, %v366_v41  ;;  %v1034_v57 = vpop.f32.mrb[39].mxu0  ;;  %v1162_v58 = vpop.f32.mrb[39].mxu1  ;;  %v401_v34 = vld [vmem:[#allocation2 + $0x1b0] sm:$0xff] }
 0x1a3   : > { %v2618_v44 = vpack.c.bf16 %v1526_v38, %v1526_v38  ;;  %v1463_v54 = vadd.f32 %v3458_v36, %v1392_v50  ;;  %v1263_v56 = vadd.f32 %v1160_v52, %v398_v42  ;;  %v370_v42 = vld [vmem:[#allocation2 + $0xb8] sm:$0xff] }
 0x1a4   : > { %1815 = vst.msk [vmem:[%s3469_s7 + $0x3c] sm:$0xf] %vm1799_vm1, %v2586_v43  ;;  %v1495_v61 = vmax.f32 %v1431_v53, 0.0  ;;  %v402_v43 = vld [vmem:[#allocation2 + $0x1b8] sm:$0xff] }
 0x1a5   : > { %1847 = vst.msk [vmem:[%s3469_s7 + $0xbc] sm:$0xf] %vm1799_vm1, %v2618_v44  ;;  %v1361_v59 = vld [vmem:[#allocation2 + $0x88] sm:$0xff]  ;;  %v1527_v62 = vmax.f32 %v1463_v54, 0.0 }
 0x1a6   : > { %v1393_v60 = vld [vmem:[#allocation2 + $0x188] sm:$0xff]  ;;  %v1432_v63 = vadd.f32 %v3458_v36, %v1361_v59  ;;  %1296 = vst.msk [vmem:[#allocation2 + $0x98] sm:$0xff] %vm282_vm0, %v1231_v55  ;;  %1328 = vst.msk [vmem:[#allocation2 + $0x198] sm:$0xff] %vm282_vm0, %v1263_v56  ;;  %v2587_v3 = vpack.c.bf16 %v1495_v61, %v1495_v61 }
 0x1a7   : > { %v1464_v0 = vadd.f32 %v3458_v36, %v1393_v60  ;;  %v2619_v4 = vpack.c.bf16 %v1527_v62, %v1527_v62  ;;  %v1037_v7 = vpop.f32.mrb[40].mxu0  ;;  %v1165_v8 = vpop.f32.mrb[40].mxu1 }
 0x1a8   : > { %v1496_v5 = vmax.f32 %v1432_v63, 0.0  ;;  %1816 = vst.msk [vmem:[%s3469_s7 + $0x40] sm:$0xf] %vm1799_vm1, %v2587_v3  ;;  %v1232_v13 = vadd.f32 %v1037_v7, %v367_v1  ;;  %v1264_v14 = vadd.f32 %v1165_v8, %v399_v2  ;;  %v1039_v15 = vpop.f32.mrb[41].mxu0  ;;  %v1167_v16 = vpop.f32.mrb[41].mxu1  ;;  %v371_v2 = vld [vmem:[#allocation2 + $0xc0] sm:$0xff] }
 0x1a9   : > { %v1528_v6 = vmax.f32 %v1464_v0, 0.0  ;;  %1848 = vst.msk [vmem:[%s3469_s7 + $0xc0] sm:$0xf] %vm1799_vm1, %v2619_v4  ;;  %v1362_v17 = vld [vmem:[#allocation2 + $0x90] sm:$0xff]  ;;  %v1040_v19 = vpop.f32.mrb[42].mxu0  ;;  %v1168_v20 = vpop.f32.mrb[42].mxu1 }
 0x1aa   : > { %v2588_v11 = vpack.c.bf16 %v1496_v5, %v1496_v5  ;;  %v1394_v18 = vld [vmem:[#allocation2 + $0x190] sm:$0xff]  ;;  %v1433_v21 = vadd.f32 %v3458_v36, %v1362_v17  ;;  %1297 = vst.msk [vmem:[#allocation2 + $0xa0] sm:$0xff] %vm282_vm0, %v1232_v13  ;;  %1329 = vst.msk [vmem:[#allocation2 + $0x1a0] sm:$0xff] %vm282_vm0, %v1264_v14  ;;  %v1233_v23 = vadd.f32 %v1040_v19, %v368_v9  ;;  %v1042_v25 = vpop.f32.mrb[43].mxu0  ;;  %v1170_v26 = vpop.f32.mrb[43].mxu1  ;;  %v403_v3 = vld [vmem:[#allocation2 + $0x1c0] sm:$0xff] }
 0x1ab   : > { %v2620_v12 = vpack.c.bf16 %v1528_v6, %v1528_v6  ;;  %v1465_v22 = vadd.f32 %v3458_v36, %v1394_v18  ;;  %v1265_v24 = vadd.f32 %v1168_v20, %v400_v10  ;;  %v372_v10 = vld [vmem:[#allocation2 + $0xc8] sm:$0xff] }
 0x1ac   : > { %1817 = vst.msk [vmem:[%s3469_s7 + $0x44] sm:$0xf] %vm1799_vm1, %v2588_v11  ;;  %v1497_v29 = vmax.f32 %v1433_v21, 0.0  ;;  %v404_v11 = vld [vmem:[#allocation2 + $0x1c8] sm:$0xff] }
 0x1ad   : > { %1849 = vst.msk [vmem:[%s3469_s7 + $0xc4] sm:$0xf] %vm1799_vm1, %v2620_v12  ;;  %v1363_v27 = vld [vmem:[#allocation2 + $0x98] sm:$0xff]  ;;  %v1529_v30 = vmax.f32 %v1465_v22, 0.0 }
 0x1ae   : > { %v1395_v28 = vld [vmem:[#allocation2 + $0x198] sm:$0xff]  ;;  %v1434_v31 = vadd.f32 %v3458_v36, %v1363_v27  ;;  %1298 = vst.msk [vmem:[#allocation2 + $0xa8] sm:$0xff] %vm282_vm0, %v1233_v23  ;;  %1330 = vst.msk [vmem:[#allocation2 + $0x1a8] sm:$0xff] %vm282_vm0, %v1265_v24  ;;  %v2589_v35 = vpack.c.bf16 %v1497_v29, %v1497_v29 }
 0x1af   : > { %v1466_v32 = vadd.f32 %v3458_v36, %v1395_v28  ;;  %v2621_v37 = vpack.c.bf16 %v1529_v30, %v1529_v30  ;;  %v1045_v40 = vpop.f32.mrb[44].mxu0  ;;  %v1173_v41 = vpop.f32.mrb[44].mxu1 }
 0x1b0   : > { %v1498_v38 = vmax.f32 %v1434_v31, 0.0  ;;  %1818 = vst.msk [vmem:[%s3469_s7 + $0x48] sm:$0xf] %vm1799_vm1, %v2589_v35  ;;  %v1234_v46 = vadd.f32 %v1045_v40, %v369_v33  ;;  %v1266_v47 = vadd.f32 %v1173_v41, %v401_v34  ;;  %v1047_v48 = vpop.f32.mrb[45].mxu0  ;;  %v1175_v49 = vpop.f32.mrb[45].mxu1  ;;  %v373_v34 = vld [vmem:[#allocation2 + $0xd0] sm:$0xff] }
 0x1b1   : > { %v1530_v39 = vmax.f32 %v1466_v32, 0.0  ;;  %1850 = vst.msk [vmem:[%s3469_s7 + $0xc8] sm:$0xf] %vm1799_vm1, %v2621_v37  ;;  %v1364_v50 = vld [vmem:[#allocation2 + $0xa0] sm:$0xff]  ;;  %v1048_v52 = vpop.f32.mrb[46].mxu0  ;;  %v1176_v53 = vpop.f32.mrb[46].mxu1 }
 0x1b2   : > { %v2590_v44 = vpack.c.bf16 %v1498_v38, %v1498_v38  ;;  %v1396_v51 = vld [vmem:[#allocation2 + $0x1a0] sm:$0xff]  ;;  %v1435_v54 = vadd.f32 %v3458_v36, %v1364_v50  ;;  %1299 = vst.msk [vmem:[#allocation2 + $0xb0] sm:$0xff] %vm282_vm0, %v1234_v46  ;;  %1331 = vst.msk [vmem:[#allocation2 + $0x1b0] sm:$0xff] %vm282_vm0, %v1266_v47  ;;  %v1235_v56 = vadd.f32 %v1048_v52, %v370_v42  ;;  %v1050_v58 = vpop.f32.mrb[47].mxu0  ;;  %v1178_v59 = vpop.f32.mrb[47].mxu1  ;;  %v405_v35 = vld [vmem:[#allocation2 + $0x1d0] sm:$0xff] }
 0x1b3   : > { %v2622_v45 = vpack.c.bf16 %v1530_v39, %v1530_v39  ;;  %v1467_v55 = vadd.f32 %v3458_v36, %v1396_v51  ;;  %v1267_v57 = vadd.f32 %v1176_v53, %v402_v43  ;;  %v374_v43 = vld [vmem:[#allocation2 + $0xd8] sm:$0xff] }
 0x1b4   : > { %1819 = vst.msk [vmem:[%s3469_s7 + $0x4c] sm:$0xf] %vm1799_vm1, %v2590_v44  ;;  %v1499_v62 = vmax.f32 %v1435_v54, 0.0  ;;  %v406_v44 = vld [vmem:[#allocation2 + $0x1d8] sm:$0xff] }
 0x1b5   : > { %1851 = vst.msk [vmem:[%s3469_s7 + $0xcc] sm:$0xf] %vm1799_vm1, %v2622_v45  ;;  %v1365_v60 = vld [vmem:[#allocation2 + $0xa8] sm:$0xff]  ;;  %v1531_v63 = vmax.f32 %v1467_v55, 0.0 }
 0x1b6   : > { %v1397_v61 = vld [vmem:[#allocation2 + $0x1a8] sm:$0xff]  ;;  %v1436_v0 = vadd.f32 %v3458_v36, %v1365_v60  ;;  %1300 = vst.msk [vmem:[#allocation2 + $0xb8] sm:$0xff] %vm282_vm0, %v1235_v56  ;;  %1332 = vst.msk [vmem:[#allocation2 + $0x1b8] sm:$0xff] %vm282_vm0, %v1267_v57  ;;  %v2591_v4 = vpack.c.bf16 %v1499_v62, %v1499_v62 }
 0x1b7   : > { %v1468_v1 = vadd.f32 %v3458_v36, %v1397_v61  ;;  %v2623_v5 = vpack.c.bf16 %v1531_v63, %v1531_v63  ;;  %v1053_v8 = vpop.f32.mrb[48].mxu0  ;;  %v1181_v9 = vpop.f32.mrb[48].mxu1 }
 0x1b8   : > { %v1500_v6 = vmax.f32 %v1436_v0, 0.0  ;;  %1820 = vst.msk [vmem:[%s3469_s7 + $0x50] sm:$0xf] %vm1799_vm1, %v2591_v4  ;;  %v1236_v14 = vadd.f32 %v1053_v8, %v371_v2  ;;  %v1268_v15 = vadd.f32 %v1181_v9, %v403_v3  ;;  %v1055_v16 = vpop.f32.mrb[49].mxu0  ;;  %v1183_v17 = vpop.f32.mrb[49].mxu1  ;;  %v375_v3 = vld [vmem:[#allocation2 + $0xe0] sm:$0xff] }
 0x1b9   : > { %v1532_v7 = vmax.f32 %v1468_v1, 0.0  ;;  %1852 = vst.msk [vmem:[%s3469_s7 + $0xd0] sm:$0xf] %vm1799_vm1, %v2623_v5  ;;  %v1366_v18 = vld [vmem:[#allocation2 + $0xb0] sm:$0xff]  ;;  %v1056_v20 = vpop.f32.mrb[50].mxu0  ;;  %v1184_v21 = vpop.f32.mrb[50].mxu1 }
 0x1ba   : > { %v2592_v12 = vpack.c.bf16 %v1500_v6, %v1500_v6  ;;  %v1398_v19 = vld [vmem:[#allocation2 + $0x1b0] sm:$0xff]  ;;  %v1437_v22 = vadd.f32 %v3458_v36, %v1366_v18  ;;  %1301 = vst.msk [vmem:[#allocation2 + $0xc0] sm:$0xff] %vm282_vm0, %v1236_v14  ;;  %1333 = vst.msk [vmem:[#allocation2 + $0x1c0] sm:$0xff] %vm282_vm0, %v1268_v15  ;;  %v1237_v24 = vadd.f32 %v1056_v20, %v372_v10  ;;  %v1058_v26 = vpop.f32.mrb[51].mxu0  ;;  %v1186_v27 = vpop.f32.mrb[51].mxu1  ;;  %v407_v4 = vld [vmem:[#allocation2 + $0x1e0] sm:$0xff] }
 0x1bb   : > { %v2624_v13 = vpack.c.bf16 %v1532_v7, %v1532_v7  ;;  %v1469_v23 = vadd.f32 %v3458_v36, %v1398_v19  ;;  %v1269_v25 = vadd.f32 %v1184_v21, %v404_v11  ;;  %v376_v11 = vld [vmem:[#allocation2 + $0xe8] sm:$0xff] }
 0x1bc   : > { %1821 = vst.msk [vmem:[%s3469_s7 + $0x54] sm:$0xf] %vm1799_vm1, %v2592_v12  ;;  %v1501_v30 = vmax.f32 %v1437_v22, 0.0  ;;  %v408_v12 = vld [vmem:[#allocation2 + $0x1e8] sm:$0xff]  ;;  %v3674_v22 = vld [vmem:[%s3929_s2] ss:$0 sm:$0xff] }
 0x1bd   : > { %1853 = vst.msk [vmem:[%s3469_s7 + $0xd4] sm:$0xf] %vm1799_vm1, %v2624_v13  ;;  %v1367_v28 = vld [vmem:[#allocation2 + $0xb8] sm:$0xff]  ;;  %v1533_v31 = vmax.f32 %v1469_v23, 0.0 }
 0x1be   : > { %v1399_v29 = vld [vmem:[#allocation2 + $0x1b8] sm:$0xff]  ;;  %v1438_v32 = vadd.f32 %v3458_v36, %v1367_v28  ;;  %1302 = vst.msk [vmem:[#allocation2 + $0xc8] sm:$0xff] %vm282_vm0, %v1237_v24  ;;  %1334 = vst.msk [vmem:[#allocation2 + $0x1c8] sm:$0xff] %vm282_vm0, %v1269_v25  ;;  %v2593_v37 = vpack.c.bf16 %v1501_v30, %v1501_v30 }
 0x1bf   : > { %v1470_v33 = vadd.f32 %v3458_v36, %v1399_v29  ;;  %v2625_v38 = vpack.c.bf16 %v1533_v31, %v1533_v31  ;;  %v1061_v41 = vpop.f32.mrb[52].mxu0  ;;  %v1189_v42 = vpop.f32.mrb[52].mxu1 }
 0x1c0   : > { %v1502_v39 = vmax.f32 %v1438_v32, 0.0  ;;  %1822 = vst.msk [vmem:[%s3469_s7 + $0x58] sm:$0xf] %vm1799_vm1, %v2593_v37  ;;  %v1238_v47 = vadd.f32 %v1061_v41, %v373_v34  ;;  %v1270_v48 = vadd.f32 %v1189_v42, %v405_v35  ;;  %v1063_v49 = vpop.f32.mrb[53].mxu0  ;;  %v1191_v50 = vpop.f32.mrb[53].mxu1  ;;  %v377_v35 = vld [vmem:[#allocation2 + $0xf0] sm:$0xff] }
 0x1c1   : > { %v1534_v40 = vmax.f32 %v1470_v33, 0.0  ;;  %1854 = vst.msk [vmem:[%s3469_s7 + $0xd8] sm:$0xf] %vm1799_vm1, %v2625_v38  ;;  %v1368_v51 = vld [vmem:[#allocation2 + $0xc0] sm:$0xff]  ;;  %v1064_v53 = vpop.f32.mrb[54].mxu0  ;;  %v1192_v54 = vpop.f32.mrb[54].mxu1 }
 0x1c2   : > { %v2594_v45 = vpack.c.bf16 %v1502_v39, %v1502_v39  ;;  %v1400_v52 = vld [vmem:[#allocation2 + $0x1c0] sm:$0xff]  ;;  %v1439_v55 = vadd.f32 %v3458_v36, %v1368_v51  ;;  %1303 = vst.msk [vmem:[#allocation2 + $0xd0] sm:$0xff] %vm282_vm0, %v1238_v47  ;;  %1335 = vst.msk [vmem:[#allocation2 + $0x1d0] sm:$0xff] %vm282_vm0, %v1270_v48  ;;  %v1239_v57 = vadd.f32 %v1064_v53, %v374_v43  ;;  %v1066_v59 = vpop.f32.mrb[55].mxu0  ;;  %v1194_v60 = vpop.f32.mrb[55].mxu1  ;;  %v409_v37 = vld [vmem:[#allocation2 + $0x1f0] sm:$0xff] }
 0x1c3   : > { %v2626_v46 = vpack.c.bf16 %v1534_v40, %v1534_v40  ;;  %v1471_v56 = vadd.f32 %v3458_v36, %v1400_v52  ;;  %v1271_v58 = vadd.f32 %v1192_v54, %v406_v44  ;;  %v378_v44 = vld [vmem:[#allocation2 + $0xf8] sm:$0xff] }
 0x1c4   : > { %1823 = vst.msk [vmem:[%s3469_s7 + $0x5c] sm:$0xf] %vm1799_vm1, %v2594_v45  ;;  %v1503_v63 = vmax.f32 %v1439_v55, 0.0  ;;  %v410_v45 = vld [vmem:[#allocation2 + $0x1f8] sm:$0xff] }
 0x1c5   : > { %1855 = vst.msk [vmem:[%s3469_s7 + $0xdc] sm:$0xf] %vm1799_vm1, %v2626_v46  ;;  %v1369_v61 = vld [vmem:[#allocation2 + $0xc8] sm:$0xff]  ;;  %v1535_v0 = vmax.f32 %v1471_v56, 0.0 }
 0x1c6   : > { %v1401_v62 = vld [vmem:[#allocation2 + $0x1c8] sm:$0xff]  ;;  %v1440_v1 = vadd.f32 %v3458_v36, %v1369_v61  ;;  %1304 = vst.msk [vmem:[#allocation2 + $0xd8] sm:$0xff] %vm282_vm0, %v1239_v57  ;;  %1336 = vst.msk [vmem:[#allocation2 + $0x1d8] sm:$0xff] %vm282_vm0, %v1271_v58  ;;  %v2595_v5 = vpack.c.bf16 %v1503_v63, %v1503_v63 }
 0x1c7   : > { %v1472_v2 = vadd.f32 %v3458_v36, %v1401_v62  ;;  %v2627_v6 = vpack.c.bf16 %v1535_v0, %v1535_v0  ;;  %v1069_v9 = vpop.f32.mrb[56].mxu0  ;;  %v1197_v10 = vpop.f32.mrb[56].mxu1 }
 0x1c8   : > { %v1504_v7 = vmax.f32 %v1440_v1, 0.0  ;;  %1824 = vst.msk [vmem:[%s3469_s7 + $0x60] sm:$0xf] %vm1799_vm1, %v2595_v5  ;;  %v1240_v14 = vadd.f32 %v1069_v9, %v375_v3  ;;  %v1272_v15 = vadd.f32 %v1197_v10, %v407_v4  ;;  %v1071_v16 = vpop.f32.mrb[57].mxu0  ;;  %v1199_v17 = vpop.f32.mrb[57].mxu1 }
 0x1c9   : > { %v1536_v8 = vmax.f32 %v1472_v2, 0.0  ;;  %1856 = vst.msk [vmem:[%s3469_s7 + $0xe0] sm:$0xf] %vm1799_vm1, %v2627_v6  ;;  %v1370_v18 = vld [vmem:[#allocation2 + $0xd0] sm:$0xff]  ;;  %v1072_v20 = vpop.f32.mrb[58].mxu0  ;;  %v1200_v21 = vpop.f32.mrb[58].mxu1 }
 0x1ca   : > { %v2596_v36 = vpack.c.bf16 %v1504_v7, %v1504_v7  ;;  %v1402_v19 = vld [vmem:[#allocation2 + $0x1d0] sm:$0xff]  ;;  %v1441_v23 = vadd.f32 %v3674_v22, %v1370_v18  ;;  %1305 = vst.msk [vmem:[#allocation2 + $0xe0] sm:$0xff] %vm282_vm0, %v1240_v14  ;;  %1337 = vst.msk [vmem:[#allocation2 + $0x1e0] sm:$0xff] %vm282_vm0, %v1272_v15  ;;  %v1241_v25 = vadd.f32 %v1072_v20, %v376_v11  ;;  %v1074_v27 = vpop.f32.mrb[59].mxu0  ;;  %v1202_v28 = vpop.f32.mrb[59].mxu1 }
 0x1cb   : > { %v2628_v13 = vpack.c.bf16 %v1536_v8, %v1536_v8  ;;  %v1473_v24 = vadd.f32 %v3674_v22, %v1402_v19  ;;  %v1273_v26 = vadd.f32 %v1200_v21, %v408_v12 }
 0x1cc   : > { %1825 = vst.msk [vmem:[%s3469_s7 + $0x64] sm:$0xf] %vm1799_vm1, %v2596_v36  ;;  %v1505_v31 = vmax.f32 %v1441_v23, 0.0 }
 0x1cd   : > { %1857 = vst.msk [vmem:[%s3469_s7 + $0xe4] sm:$0xf] %vm1799_vm1, %v2628_v13  ;;  %v1371_v29 = vld [vmem:[#allocation2 + $0xd8] sm:$0xff]  ;;  %v1537_v32 = vmax.f32 %v1473_v24, 0.0 }
 0x1ce   : > { %v1403_v30 = vld [vmem:[#allocation2 + $0x1d8] sm:$0xff]  ;;  %v1442_v33 = vadd.f32 %v3674_v22, %v1371_v29  ;;  %1306 = vst.msk [vmem:[#allocation2 + $0xe8] sm:$0xff] %vm282_vm0, %v1241_v25  ;;  %1338 = vst.msk [vmem:[#allocation2 + $0x1e8] sm:$0xff] %vm282_vm0, %v1273_v26  ;;  %v2597_v38 = vpack.c.bf16 %v1505_v31, %v1505_v31 }
 0x1cf   : > { %v1474_v34 = vadd.f32 %v3674_v22, %v1403_v30  ;;  %v2629_v39 = vpack.c.bf16 %v1537_v32, %v1537_v32  ;;  %v1077_v42 = vpop.f32.mrb[60].mxu0  ;;  %v1205_v43 = vpop.f32.mrb[60].mxu1 }
 0x1d0   : > { %v1506_v40 = vmax.f32 %v1442_v33, 0.0  ;;  %1826 = vst.msk [vmem:[%s3469_s7 + $0x68] sm:$0xf] %vm1799_vm1, %v2597_v38  ;;  %v1242_v48 = vadd.f32 %v1077_v42, %v377_v35  ;;  %v1274_v49 = vadd.f32 %v1205_v43, %v409_v37  ;;  %v1079_v50 = vpop.f32.mrb[61].mxu0  ;;  %v1207_v51 = vpop.f32.mrb[61].mxu1 }
 0x1d1   : > { %v1538_v41 = vmax.f32 %v1474_v34, 0.0  ;;  %1858 = vst.msk [vmem:[%s3469_s7 + $0xe8] sm:$0xf] %vm1799_vm1, %v2629_v39  ;;  %v1372_v52 = vld [vmem:[#allocation2 + $0xe0] sm:$0xff]  ;;  %v1080_v54 = vpop.f32.mrb[62].mxu0  ;;  %v1208_v55 = vpop.f32.mrb[62].mxu1 }
 0x1d2   : > { %v2598_v46 = vpack.c.bf16 %v1506_v40, %v1506_v40  ;;  %v1404_v53 = vld [vmem:[#allocation2 + $0x1e0] sm:$0xff]  ;;  %v1443_v56 = vadd.f32 %v3674_v22, %v1372_v52  ;;  %1307 = vst.msk [vmem:[#allocation2 + $0xf0] sm:$0xff] %vm282_vm0, %v1242_v48  ;;  %1339 = vst.msk [vmem:[#allocation2 + $0x1f0] sm:$0xff] %vm282_vm0, %v1274_v49  ;;  %v1243_v58 = vadd.f32 %v1080_v54, %v378_v44  ;;  %v1082_v60 = vpop.f32.mrb[63].mxu0  ;;  %v1210_v61 = vpop.f32.mrb[63].mxu1 }
 0x1d3   : > { %v2630_v47 = vpack.c.bf16 %v1538_v41, %v1538_v41  ;;  %v1475_v57 = vadd.f32 %v3674_v22, %v1404_v53  ;;  %v1275_v59 = vadd.f32 %v1208_v55, %v410_v45 }
 0x1d4   : > { %1827 = vst.msk [vmem:[%s3469_s7 + $0x6c] sm:$0xf] %vm1799_vm1, %v2598_v46  ;;  %v1507_v0 = vmax.f32 %v1443_v56, 0.0 }
 0x1d5   : > { %1859 = vst.msk [vmem:[%s3469_s7 + $0xec] sm:$0xf] %vm1799_vm1, %v2630_v47  ;;  %v1373_v62 = vld [vmem:[#allocation2 + $0xe8] sm:$0xff]  ;;  %v1539_v1 = vmax.f32 %v1475_v57, 0.0 }
 0x1d6   : > { %v1405_v63 = vld [vmem:[#allocation2 + $0x1e8] sm:$0xff]  ;;  %v1444_v2 = vadd.f32 %v3674_v22, %v1373_v62  ;;  %1308 = vst.msk [vmem:[#allocation2 + $0xf8] sm:$0xff] %vm282_vm0, %v1243_v58  ;;  %1340 = vst.msk [vmem:[#allocation2 + $0x1f8] sm:$0xff] %vm282_vm0, %v1275_v59  ;;  %v2599_v4 = vpack.c.bf16 %v1507_v0, %v1507_v0 }
 0x1d7   : > { %v1476_v3 = vadd.f32 %v3674_v22, %v1405_v63  ;;  %v2631_v5 = vpack.c.bf16 %v1539_v1, %v1539_v1 }
 0x1d8   : > { %v1508_v6 = vmax.f32 %v1444_v2, 0.0  ;;  %1828 = vst.msk [vmem:[%s3469_s7 + $0x70] sm:$0xf] %vm1799_vm1, %v2599_v4 }
 0x1d9   : > { %v1540_v7 = vmax.f32 %v1476_v3, 0.0  ;;  %1860 = vst.msk [vmem:[%s3469_s7 + $0xf0] sm:$0xf] %vm1799_vm1, %v2631_v5  ;;  %v1374_v10 = vld [vmem:[#allocation2 + $0xf0] sm:$0xff] }
 0x1da   : > { %v2600_v8 = vpack.c.bf16 %v1508_v6, %v1508_v6  ;;  %v1406_v11 = vld [vmem:[#allocation2 + $0x1f0] sm:$0xff]  ;;  %v1445_v12 = vadd.f32 %v3674_v22, %v1374_v10 }
 0x1db   : > { %v2632_v9 = vpack.c.bf16 %v1540_v7, %v1540_v7  ;;  %v1477_v36 = vadd.f32 %v3674_v22, %v1406_v11 }
 0x1dc   : > { %1829 = vst.msk [vmem:[%s3469_s7 + $0x74] sm:$0xf] %vm1799_vm1, %v2600_v8  ;;  %v1509_v15 = vmax.f32 %v1445_v12, 0.0 }
 0x1dd   : > { %1861 = vst.msk [vmem:[%s3469_s7 + $0xf4] sm:$0xf] %vm1799_vm1, %v2632_v9  ;;  %v1375_v13 = vld [vmem:[#allocation2 + $0xf8] sm:$0xff]  ;;  %v1541_v16 = vmax.f32 %v1477_v36, 0.0 }
 0x1de   : > { %v1407_v14 = vld [vmem:[#allocation2 + $0x1f8] sm:$0xff]  ;;  %v1446_v17 = vadd.f32 %v3674_v22, %v1375_v13  ;;  %v2601_v19 = vpack.c.bf16 %v1509_v15, %v1509_v15 }
 0x1df   : > { %v1478_v18 = vadd.f32 %v3674_v22, %v1407_v14  ;;  %v2633_v20 = vpack.c.bf16 %v1541_v16, %v1541_v16  ;;  %1870 = sbr.rel (!%p3115_p9) target bundleno = 577 (0x241), region = 48 }
 0x1e0   : > { %v1510_v21 = vmax.f32 %v1446_v17, 0.0  ;;  %1830 = vst.msk [vmem:[%s3469_s7 + $0x78] sm:$0xf] %vm1799_vm1, %v2601_v19 }
 0x1e1   : > { %v1542_v23 = vmax.f32 %v1478_v18, 0.0  ;;  %1862 = vst.msk [vmem:[%s3469_s7 + $0xf8] sm:$0xf] %vm1799_vm1, %v2633_v20 }
 0x1e2   : > { %v2602_v24 = vpack.c.bf16 %v1510_v21, %v1510_v21 }
 0x1e3   : > { %v2634_v25 = vpack.c.bf16 %v1542_v23, %v1542_v23 }
 0x1e4   : > { %1831 = vst.msk [vmem:[%s3469_s7 + $0x7c] sm:$0xf] %vm1799_vm1, %v2602_v24 }
 0x1e5   : > { %1863 = vst.msk [vmem:[%s3469_s7 + $0xfc] sm:$0xf] %vm1799_vm1, %v2634_v25 }
 0x1e6   : > { %s3946_s22 = smov (!%p1873_p8, %s1872_s22), 64 }
 0x1e7   : > { %s2553_s25 = sshll.u32 %s3946_s22, 6 }
 0x1e8   : > { %p2556_p12 = scmp.eq.s32.totalorder %s2553_s25, 0 }
 0x1e9   : > { %s3733_s24 = sshrl.u32 (!%p2556_p12), %s3946_s22, 6 }
 0x1ea   : > { %1882 = sbr.rel (%p2556_p12) target bundleno = 577 (0x241), region = 52  ;;  %p2557_p9 = scmp.le.s32.totalorder (!%p2556_p12), %s3733_s24, 0 }
 0x1f1   : > { %2312 = sbr.rel (%p2557_p9) target bundleno = 556 (0x22c), region = 136  ;;  %s3933_s15 = smov (!%p2557_p9), %s3727_s21 }
 0x1f2   : > { %s3934_s26 = smov (!%p2557_p9), %s3469_s7  ;;  %s3742_s27 = smov (!%p2557_p9), 0  }
 0x1f3   : > { %s3744_s28 = smov (!%p2557_p9), 0  }
 0x1f8 LB: >> { %v1898_v22 = vld [vmem:[%s3018_s26] sm:$0xf]  ;;  %v1900_v26 = vld [vmem:[%s3018_s26 + $0x4] sm:$0xf]  ;;  %v1902_v27 = vld [vmem:[%s3018_s26 + $0x8] sm:$0xf]  ;;  %s3026_s28 = sphi %s3744_s28, %s1892_s28   ;;  %s3022_s27 = sphi %s3742_s27, %s3935_s27   ;;  %s3018_s26 = sphi %s3934_s26, %s2031_s26   ;;  %s3014_s15 = sphi %s3933_s15, %s2032_s15  }
 0x1f9   : >> { %1899 = vst [vmem:[%s3014_s15] sm:$0xf] %v1898_v22  ;;  %1901 = vst [vmem:[%s3014_s15 + $0x4] sm:$0xf] %v1900_v26  ;;  %v1904_v28 = vld [vmem:[%s3018_s26 + $0xc] sm:$0xf]  ;;  %s2026_s30 = sadd.s32 1, %s3022_s27 }
 0x1fa   : >> { %1903 = vst [vmem:[%s3014_s15 + $0x8] sm:$0xf] %v1902_v27  ;;  %v1906_v29 = vld [vmem:[%s3018_s26 + $0x10] sm:$0xf]  ;;  %v1908_v30 = vld [vmem:[%s3018_s26 + $0x14] sm:$0xf]  ;;  %p2027_p7 = scmp.ge.s32.totalorder %s2026_s30, %s3733_s24 }
 0x1fb   : >> { %1905 = vst [vmem:[%s3014_s15 + $0xc] sm:$0xf] %v1904_v28  ;;  %1907 = vst [vmem:[%s3014_s15 + $0x10] sm:$0xf] %v1906_v29  ;;  %v1910_v31 = vld [vmem:[%s3018_s26 + $0x18] sm:$0xf] }
 0x1fc   : >> { %1909 = vst [vmem:[%s3014_s15 + $0x14] sm:$0xf] %v1908_v30  ;;  %v1912_v32 = vld [vmem:[%s3018_s26 + $0x1c] sm:$0xf]  ;;  %v1914_v33 = vld [vmem:[%s3018_s26 + $0x20] sm:$0xf] }
 0x1fd   : >> { %1911 = vst [vmem:[%s3014_s15 + $0x18] sm:$0xf] %v1910_v31  ;;  %1913 = vst [vmem:[%s3014_s15 + $0x1c] sm:$0xf] %v1912_v32  ;;  %v1916_v34 = vld [vmem:[%s3018_s26 + $0x24] sm:$0xf] }
 0x1fe   : >> { %1915 = vst [vmem:[%s3014_s15 + $0x20] sm:$0xf] %v1914_v33  ;;  %v1918_v35 = vld [vmem:[%s3018_s26 + $0x28] sm:$0xf]  ;;  %v1920_v37 = vld [vmem:[%s3018_s26 + $0x2c] sm:$0xf] }
 0x1ff   : >> { %1917 = vst [vmem:[%s3014_s15 + $0x24] sm:$0xf] %v1916_v34  ;;  %1919 = vst [vmem:[%s3014_s15 + $0x28] sm:$0xf] %v1918_v35  ;;  %v1922_v38 = vld [vmem:[%s3018_s26 + $0x30] sm:$0xf] }
 0x200   : >> { %1921 = vst [vmem:[%s3014_s15 + $0x2c] sm:$0xf] %v1920_v37  ;;  %v1924_v39 = vld [vmem:[%s3018_s26 + $0x34] sm:$0xf]  ;;  %v1926_v40 = vld [vmem:[%s3018_s26 + $0x38] sm:$0xf] }
 0x201   : >> { %1923 = vst [vmem:[%s3014_s15 + $0x30] sm:$0xf] %v1922_v38  ;;  %1925 = vst [vmem:[%s3014_s15 + $0x34] sm:$0xf] %v1924_v39  ;;  %v1928_v41 = vld [vmem:[%s3018_s26 + $0x3c] sm:$0xf] }
 0x202   : >> { %1927 = vst [vmem:[%s3014_s15 + $0x38] sm:$0xf] %v1926_v40  ;;  %v1930_v42 = vld [vmem:[%s3018_s26 + $0x40] sm:$0xf]  ;;  %v1932_v43 = vld [vmem:[%s3018_s26 + $0x44] sm:$0xf] }
 0x203   : >> { %1929 = vst [vmem:[%s3014_s15 + $0x3c] sm:$0xf] %v1928_v41  ;;  %1931 = vst [vmem:[%s3014_s15 + $0x40] sm:$0xf] %v1930_v42  ;;  %v1934_v44 = vld [vmem:[%s3018_s26 + $0x48] sm:$0xf] }
 0x204   : >> { %1933 = vst [vmem:[%s3014_s15 + $0x44] sm:$0xf] %v1932_v43  ;;  %v1936_v45 = vld [vmem:[%s3018_s26 + $0x4c] sm:$0xf]  ;;  %v1938_v46 = vld [vmem:[%s3018_s26 + $0x50] sm:$0xf] }
 0x205   : >> { %1935 = vst [vmem:[%s3014_s15 + $0x48] sm:$0xf] %v1934_v44  ;;  %1937 = vst [vmem:[%s3014_s15 + $0x4c] sm:$0xf] %v1936_v45  ;;  %v1940_v47 = vld [vmem:[%s3018_s26 + $0x54] sm:$0xf] }
 0x206   : >> { %1939 = vst [vmem:[%s3014_s15 + $0x50] sm:$0xf] %v1938_v46  ;;  %v1942_v48 = vld [vmem:[%s3018_s26 + $0x58] sm:$0xf]  ;;  %v1944_v49 = vld [vmem:[%s3018_s26 + $0x5c] sm:$0xf] }
 0x207   : >> { %1941 = vst [vmem:[%s3014_s15 + $0x54] sm:$0xf] %v1940_v47  ;;  %1943 = vst [vmem:[%s3014_s15 + $0x58] sm:$0xf] %v1942_v48  ;;  %v1946_v50 = vld [vmem:[%s3018_s26 + $0x60] sm:$0xf] }
 0x208   : >> { %1945 = vst [vmem:[%s3014_s15 + $0x5c] sm:$0xf] %v1944_v49  ;;  %v1948_v51 = vld [vmem:[%s3018_s26 + $0x64] sm:$0xf]  ;;  %v1950_v52 = vld [vmem:[%s3018_s26 + $0x68] sm:$0xf] }
 0x209   : >> { %1947 = vst [vmem:[%s3014_s15 + $0x60] sm:$0xf] %v1946_v50  ;;  %1949 = vst [vmem:[%s3014_s15 + $0x64] sm:$0xf] %v1948_v51  ;;  %v1952_v53 = vld [vmem:[%s3018_s26 + $0x6c] sm:$0xf] }
 0x20a   : >> { %1951 = vst [vmem:[%s3014_s15 + $0x68] sm:$0xf] %v1950_v52  ;;  %v1954_v54 = vld [vmem:[%s3018_s26 + $0x70] sm:$0xf]  ;;  %v1956_v55 = vld [vmem:[%s3018_s26 + $0x74] sm:$0xf] }
 0x20b   : >> { %1953 = vst [vmem:[%s3014_s15 + $0x6c] sm:$0xf] %v1952_v53  ;;  %1955 = vst [vmem:[%s3014_s15 + $0x70] sm:$0xf] %v1954_v54  ;;  %v1958_v56 = vld [vmem:[%s3018_s26 + $0x78] sm:$0xf] }
 0x20c   : >> { %1957 = vst [vmem:[%s3014_s15 + $0x74] sm:$0xf] %v1956_v55  ;;  %v1960_v57 = vld [vmem:[%s3018_s26 + $0x7c] sm:$0xf]  ;;  %v1962_v58 = vld [vmem:[%s3018_s26 + $0x80] sm:$0xf] }
 0x20d   : >> { %1959 = vst [vmem:[%s3014_s15 + $0x78] sm:$0xf] %v1958_v56  ;;  %1961 = vst [vmem:[%s3014_s15 + $0x7c] sm:$0xf] %v1960_v57  ;;  %v1964_v59 = vld [vmem:[%s3018_s26 + $0x84] sm:$0xf] }
 0x20e   : >> { %1963 = vst [vmem:[%s3014_s15 + $0x80] sm:$0xf] %v1962_v58  ;;  %v1966_v60 = vld [vmem:[%s3018_s26 + $0x88] sm:$0xf]  ;;  %v1968_v61 = vld [vmem:[%s3018_s26 + $0x8c] sm:$0xf] }
 0x20f   : >> { %1965 = vst [vmem:[%s3014_s15 + $0x84] sm:$0xf] %v1964_v59  ;;  %1967 = vst [vmem:[%s3014_s15 + $0x88] sm:$0xf] %v1966_v60  ;;  %v1970_v62 = vld [vmem:[%s3018_s26 + $0x90] sm:$0xf] }
 0x210   : >> { %1969 = vst [vmem:[%s3014_s15 + $0x8c] sm:$0xf] %v1968_v61  ;;  %v1972_v63 = vld [vmem:[%s3018_s26 + $0x94] sm:$0xf]  ;;  %v1974_v0 = vld [vmem:[%s3018_s26 + $0x98] sm:$0xf] }
 0x211   : >> { %1971 = vst [vmem:[%s3014_s15 + $0x90] sm:$0xf] %v1970_v62  ;;  %1973 = vst [vmem:[%s3014_s15 + $0x94] sm:$0xf] %v1972_v63  ;;  %v1976_v1 = vld [vmem:[%s3018_s26 + $0x9c] sm:$0xf] }
 0x212   : >> { %1975 = vst [vmem:[%s3014_s15 + $0x98] sm:$0xf] %v1974_v0  ;;  %v1978_v2 = vld [vmem:[%s3018_s26 + $0xa0] sm:$0xf]  ;;  %v1980_v3 = vld [vmem:[%s3018_s26 + $0xa4] sm:$0xf] }
 0x213   : >> { %1977 = vst [vmem:[%s3014_s15 + $0x9c] sm:$0xf] %v1976_v1  ;;  %1979 = vst [vmem:[%s3014_s15 + $0xa0] sm:$0xf] %v1978_v2  ;;  %v1982_v4 = vld [vmem:[%s3018_s26 + $0xa8] sm:$0xf] }
 0x214   : >> { %1981 = vst [vmem:[%s3014_s15 + $0xa4] sm:$0xf] %v1980_v3  ;;  %v1984_v5 = vld [vmem:[%s3018_s26 + $0xac] sm:$0xf]  ;;  %v1986_v6 = vld [vmem:[%s3018_s26 + $0xb0] sm:$0xf] }
 0x215   : >> { %1983 = vst [vmem:[%s3014_s15 + $0xa8] sm:$0xf] %v1982_v4  ;;  %1985 = vst [vmem:[%s3014_s15 + $0xac] sm:$0xf] %v1984_v5  ;;  %v1988_v7 = vld [vmem:[%s3018_s26 + $0xb4] sm:$0xf] }
 0x216   : >> { %1987 = vst [vmem:[%s3014_s15 + $0xb0] sm:$0xf] %v1986_v6  ;;  %v1990_v8 = vld [vmem:[%s3018_s26 + $0xb8] sm:$0xf]  ;;  %v1992_v9 = vld [vmem:[%s3018_s26 + $0xbc] sm:$0xf] }
 0x217   : >> { %1989 = vst [vmem:[%s3014_s15 + $0xb4] sm:$0xf] %v1988_v7  ;;  %1991 = vst [vmem:[%s3014_s15 + $0xb8] sm:$0xf] %v1990_v8  ;;  %v1994_v10 = vld [vmem:[%s3018_s26 + $0xc0] sm:$0xf] }
 0x218   : >> { %1993 = vst [vmem:[%s3014_s15 + $0xbc] sm:$0xf] %v1992_v9  ;;  %v1996_v11 = vld [vmem:[%s3018_s26 + $0xc4] sm:$0xf]  ;;  %v1998_v12 = vld [vmem:[%s3018_s26 + $0xc8] sm:$0xf] }
 0x219   : >> { %1995 = vst [vmem:[%s3014_s15 + $0xc0] sm:$0xf] %v1994_v10  ;;  %1997 = vst [vmem:[%s3014_s15 + $0xc4] sm:$0xf] %v1996_v11  ;;  %v2000_v36 = vld [vmem:[%s3018_s26 + $0xcc] sm:$0xf] }
 0x21a   : >> { %1999 = vst [vmem:[%s3014_s15 + $0xc8] sm:$0xf] %v1998_v12  ;;  %v2002_v13 = vld [vmem:[%s3018_s26 + $0xd0] sm:$0xf]  ;;  %v2004_v14 = vld [vmem:[%s3018_s26 + $0xd4] sm:$0xf] }
 0x21b   : >> { %2001 = vst [vmem:[%s3014_s15 + $0xcc] sm:$0xf] %v2000_v36  ;;  %2003 = vst [vmem:[%s3014_s15 + $0xd0] sm:$0xf] %v2002_v13  ;;  %v2006_v15 = vld [vmem:[%s3018_s26 + $0xd8] sm:$0xf] }
 0x21c   : >> { %2005 = vst [vmem:[%s3014_s15 + $0xd4] sm:$0xf] %v2004_v14  ;;  %v2008_v16 = vld [vmem:[%s3018_s26 + $0xdc] sm:$0xf]  ;;  %v2010_v17 = vld [vmem:[%s3018_s26 + $0xe0] sm:$0xf] }
 0x21d   : >> { %2007 = vst [vmem:[%s3014_s15 + $0xd8] sm:$0xf] %v2006_v15  ;;  %2009 = vst [vmem:[%s3014_s15 + $0xdc] sm:$0xf] %v2008_v16  ;;  %v2012_v18 = vld [vmem:[%s3018_s26 + $0xe4] sm:$0xf] }
 0x21e   : >> { %2011 = vst [vmem:[%s3014_s15 + $0xe0] sm:$0xf] %v2010_v17  ;;  %v2014_v19 = vld [vmem:[%s3018_s26 + $0xe8] sm:$0xf]  ;;  %v2016_v20 = vld [vmem:[%s3018_s26 + $0xec] sm:$0xf] }
 0x21f   : >> { %2013 = vst [vmem:[%s3014_s15 + $0xe4] sm:$0xf] %v2012_v18  ;;  %2015 = vst [vmem:[%s3014_s15 + $0xe8] sm:$0xf] %v2014_v19  ;;  %v2018_v21 = vld [vmem:[%s3018_s26 + $0xf0] sm:$0xf] }
 0x220   : >> { %2017 = vst [vmem:[%s3014_s15 + $0xec] sm:$0xf] %v2016_v20  ;;  %v2020_v23 = vld [vmem:[%s3018_s26 + $0xf4] sm:$0xf]  ;;  %v2022_v24 = vld [vmem:[%s3018_s26 + $0xf8] sm:$0xf] }
 0x221   : >> { %2019 = vst [vmem:[%s3014_s15 + $0xf0] sm:$0xf] %v2018_v21  ;;  %2021 = vst [vmem:[%s3014_s15 + $0xf4] sm:$0xf] %v2020_v23  ;;  %v2024_v25 = vld [vmem:[%s3018_s26 + $0xfc] sm:$0xf] }
 0x222   : >> { %2023 = vst [vmem:[%s3014_s15 + $0xf8] sm:$0xf] %v2022_v24  ;;  %2025 = vst [vmem:[%s3014_s15 + $0xfc] sm:$0xf] %v2024_v25  ;;  %s3948_s30 = smov (%p2027_p7, %s2026_s30), 0  ;;  %s1892_s28 = sadd.s32 1, %s3026_s28  }
 0x223   : >> { %s2558_s5 = sshll.u32 %s3948_s30, 8  ;;  %p1891_p10 = scmp.ge.s32.totalorder %s1892_s28, %s3733_s24 }
 0x224   : >> { %s2031_s26 = scalar_lea.vmem %s3469_s7, %s2558_s5 [#allocation5]   ;;  %s2032_s15 = scalar_lea.vmem %s3727_s21, %s2558_s5  }
 0x225   : >> { %s3935_s27 = smov %s3948_s30  ;;  %1894 = sbr.rel (!%p1891_p10) target bundleno = 504 (0x1f8), region = 142 }
 0x22c PF: > { %s3901_s6 = sand.u32 63, %s3946_s22   ;;  %s2636_s12 = sshll.u32 %s3733_s24, 8 }
 0x22d   : > { %s2037_s8 = scalar_lea.vmem %s3469_s7, %s2636_s12 [#allocation5]   ;;  %s2039_s11 = scalar_lea.vmem %s3727_s21, %s2636_s12  }
 0x22e   : > { %p2563_p11 = scmp.le.s32.totalorder %s3901_s6, 0 }
 0x22f   : > { %s3028_s29 = smov (!%p2563_p11), %s2039_s11   ;;  %s3032_s4 = smov (!%p2563_p11), %s2037_s8  }
 0x230   : > { %2326 = sbr.rel (%p2563_p11) target bundleno = 577 (0x241), region = 147  ;;  %s3036_s9 = smov (!%p2563_p11), 0  }
 0x231   : > { %s3040_s10 = smov (!%p2563_p11), 0  }
 0x237 LB: >> { %v2049_v22 = vld [vmem:[%s3034_s4] sm:$0xf]  ;;  %s2051_s22 = sadd.s32 1, %s3038_s9  ;;  %s2043_s10 = sadd.s32 1, %s3042_s10   ;;  %s3042_s10 = sphi %s3040_s10, %s2043_s10   ;;  %s3038_s9 = sphi %s3036_s9, %s3037_s9   ;;  %s3034_s4 = sphi %s3032_s4, %s2056_s4   ;;  %s3030_s29 = sphi %s3028_s29, %s2057_s29  }
 0x238   : >> { %2050 = vst [vmem:[%s3030_s29] sm:$0xf] %v2049_v22  ;;  %p2052_p13 = scmp.ge.s32.totalorder %s2051_s22, %s3901_s6  ;;  %p2042_p0 = scmp.ge.s32.totalorder %s2043_s10, %s3901_s6 }
 0x23a   : >> { %s3950_s22 = smov (%p2052_p13, %s2051_s22), 0  ;;  %2045 = sbr.rel (!%p2042_p0) target bundleno = 567 (0x237), region = 153 }
 0x23b   : >> { %s2564_s7 = sshll.u32 %s3950_s22, 2  ;;  %s3037_s9 = smov %s3950_s22  }
 0x23c   : >> { %s2056_s4 = scalar_lea.vmem %s2037_s8, %s2564_s7 [#allocation5]   ;;  %s2057_s29 = scalar_lea.vmem %s2039_s11, %s2564_s7  }
 0x241 PF: > { %s16_s17 = sadd.s32 1, %s3010_s17   ;;  %s3936_s12 = smov %s2994_s13 }
 0x242   : > { %p13_p2 = scmp.ge.s32.totalorder %s16_s17, 6   ;;  %s3937_s13 = smov %s2998_s14 }
 0x243   : > { %s3938_s14 = smov %s3113_s23  ;;  %s3939_s15 = smov %s3006_s16 }
 0x244   : > { %s3940_s16 = smov %s3942_s19  ;;  %15 = sbr.rel (!%p13_p2) target bundleno = 4 (0x4), region = 164 }
 0x24b   :  { %2244 = vsyncpa [#allocation4], 1 }
 0x24c   :  { %2246 = vsyncpa [#allocation4 + $0x1], 1 }

</bundles_post_ra>
